<compile_context>
chip_gen: v5e
topology: v5e:2x2
jax: 0.10.0
libtpu: 0.0.40
codegen_flags: <defaults>
</compile_context>

<pallas_src>
import functools
import math

import jax
import jax.numpy as jnp
from jax.experimental import pallas as pl
from jax.experimental.pallas import tpu as pltpu

# ----------------------------- model dims -----------------------------------
B = 2            # batch
S = 8            # sequence length
H = 128          # hidden size (lane-dense: multiple of 128)
NH = 2           # attention heads
HD = H // NH     # head dim
F = 256          # FFN intermediate size
VOCAB = 100      # real vocab
VOCAB_PAD = 128  # padded vocab rows so the token table packs with the weights


def _encoder_pool_kernel(ids_ref, mask_ref, pos_ref, wslab_ref, w2_ref, vec_ref,
                         out_ref, *, batch, seq, hidden, num_heads, ffn,
                         vocab_pad):
    """Whole batch: embed + 1 transformer encoder layer + masked mean pooling."""
    bs = batch * seq
    hd = hidden // num_heads
    f32 = jnp.float32
    bf16 = jnp.bfloat16

    # ---- static lane-aligned views of the packed bf16 weight slab -----------
    tok_emb = wslab_ref[:, 0:hidden]                       # (VOCAB_PAD, H)
    w_qkv = wslab_ref[:, hidden:4 * hidden]                # (H, 3H), Q pre-scaled
    wo = wslab_ref[:, 4 * hidden:5 * hidden]               # (H, H)
    w1 = wslab_ref[:, 5 * hidden:5 * hidden + ffn]         # (H, F)
    w2 = w2_ref[...]                                       # (F, H)

    # ---- tiny f32 vectors from the packed (4, 3H) slab -----------------------
    b_qkv = vec_ref[0:1, 0:3 * hidden]                     # (1, 3H)
    b1 = vec_ref[1:2, 0:ffn]                               # (1, F)
    bo = vec_ref[1:2, ffn:ffn + hidden]                    # (1, H)
    b2 = vec_ref[2:3, 0:hidden]
    g1 = vec_ref[2:3, hidden:2 * hidden]
    be1 = vec_ref[2:3, 2 * hidden:3 * hidden]
    g2 = vec_ref[3:4, 0:hidden]
    be2 = vec_ref[3:4, hidden:2 * hidden]

    # ---- embedding gather as a one-hot MXU matmul + positional add ----------
    ids = ids_ref[...]                                     # (B*S, 1) int32
    iota_v = jax.lax.broadcasted_iota(jnp.int32, (bs, vocab_pad), 1)
    onehot = (iota_v == ids).astype(bf16)                  # (B*S, VOCAB_PAD)
    pos = jnp.concatenate([pos_ref[...]] * batch, axis=0)  # (B*S, H) f32
    x = jnp.dot(onehot, tok_emb, preferred_element_type=f32) + pos

    # ---- fused QKV projection for the whole (B*S, H) slab --------------------
    qkv = jnp.dot(x.astype(bf16), w_qkv, preferred_element_type=f32) + b_qkv
    q = qkv[:, 0:hidden]                  # 1/sqrt(hd) folded into wq / bq
    k = qkv[:, hidden:2 * hidden]
    v = qkv[:, 2 * hidden:3 * hidden]

    # ---- attention: per-(batch, head) scores, single merged wo projection ----
    ctx_rows = []
    for b in range(batch):                                 # B tiny: unrolled
        rows = slice(b * seq, (b + 1) * seq)
        mrow = mask_ref[b:b + 1, :]                        # (1, S) key mask
        kbias = (mrow - 1.0) * f32(1e9)                    # 0 keep / -1e9 pad
        heads = []
        for h in range(num_heads):
            cols = slice(h * hd, (h + 1) * hd)
            qh = q[rows, cols].astype(bf16)                # (S, hd)
            kht = k[rows, cols].T.astype(bf16)             # (hd, S), xpose in f32
            vh = v[rows, cols].astype(bf16)                # (S, hd)
            s = jnp.dot(qh, kht, preferred_element_type=f32)      # (S, S)
            s = s + kbias
            s = s - jnp.max(s, axis=-1, keepdims=True)
            p = jnp.exp(s)
            p = p / jnp.sum(p, axis=-1, keepdims=True)     # exact softmax
            heads.append(jnp.dot(p.astype(bf16), vh,
                                 preferred_element_type=f32))     # (S, hd)
        ctx_rows.append(jnp.concatenate(heads, axis=-1))   # (S, H)
    ctx = jnp.concatenate(ctx_rows, axis=0)                # (B*S, H)
    attn = jnp.dot(ctx.astype(bf16), wo, preferred_element_type=f32) + bo

    def layer_norm(h, g, be):                              # f32 elementwise
        mu = jnp.mean(h, axis=-1, keepdims=True)
        var = jnp.mean((h - mu) ** 2, axis=-1, keepdims=True)
        return (h - mu) * jax.lax.rsqrt(var + 1e-5) * g + be

    # ---- residual + LayerNorm 1 ----------------------------------------------
    h1 = layer_norm(x + attn, g1, be1)                     # (B*S, H)

    # ---- FFN (GELU) -----------------------------------------------------------
    # TODO(synk): tanh-approx GELU; PyTorch nn.GELU default is exact erf.
    f = jnp.dot(h1.astype(bf16), w1, preferred_element_type=f32) + b1
    f = jax.nn.gelu(f, approximate=True)
    f = jnp.dot(f.astype(bf16), w2, preferred_element_type=f32) + b2

    # ---- residual + LayerNorm 2 -----------------------------------------------
    h2 = layer_norm(h1 + f, g2, be2)                       # (B*S, H)

    # ---- masked mean pooling: per-batch (1,S)@(S,H) + per-row store ----------
    for b in range(batch):
        mrow = mask_ref[b:b + 1, :]                        # (1, S)
        denom = jnp.maximum(jnp.sum(mrow, axis=-1, keepdims=True), f32(1.0))
        pooled = jnp.dot(mrow, h2[b * seq:(b + 1) * seq, :],
                         preferred_element_type=f32)       # (1, H)
        out_ref[b:b + 1, :] = pooled / denom               # lane-dense row store


def sentence_transformer_forward(input_ids, attention_mask, prepared):
    """input_ids: (B, S) int32, attention_mask: (B, S) -> (B, H) f32."""
    b, s = input_ids.shape
    hid = prepared["pos_emb"].shape[1]

    ids_col = input_ids.reshape(b * s, 1).astype(jnp.int32)     # (B*S, 1)
    mask = attention_mask.astype(jnp.float32)                   # (B, S)

    kernel = functools.partial(_encoder_pool_kernel, batch=b, seq=s, hidden=hid,
                               num_heads=NH, ffn=F, vocab_pad=VOCAB_PAD)
    vmem = pl.BlockSpec(memory_space=pltpu.MemorySpace.VMEM)

    out = pl.pallas_call(
        kernel,
        out_shape=jax.ShapeDtypeStruct((b, hid), jnp.float32),
        in_specs=[vmem] * 6,
        out_specs=vmem,
    )(
        ids_col, mask, prepared["pos_emb"],
        prepared["w_slab"], prepared["w2"], prepared["vec_slab"],
    )
    return out  # (B, H) sentence_embedding


def init_params(key):
    """Raw f32 'PyTorch-style' weights of the synthetic wrapped encoder."""
    ks = jax.random.split(key, 10)
    n = lambda k, shp, sc=0.02: (jax.random.normal(k, shp, jnp.float32) * sc)
    return {
        "tok_emb": n(ks[0], (VOCAB, H)),
        "pos_emb": n(ks[1], (S, H)),
        "wq": n(ks[2], (H, H)), "bq": jnp.zeros((1, H), jnp.float32),
        "wk": n(ks[3], (H, H)), "bk": jnp.zeros((1, H), jnp.float32),
        "wv": n(ks[4], (H, H)), "bv": jnp.zeros((1, H), jnp.float32),
        "wo": n(ks[5], (H, H)), "bo": jnp.zeros((1, H), jnp.float32),
        "ln1_g": jnp.ones((1, H), jnp.float32),
        "ln1_b": jnp.zeros((1, H), jnp.float32),
        "w1": n(ks[6], (H, F)), "b1": jnp.zeros((1, F), jnp.float32),
        "w2": n(ks[7], (F, H)), "b2": jnp.zeros((1, H), jnp.float32),
        "ln2_g": jnp.ones((1, H), jnp.float32),
        "ln2_b": jnp.zeros((1, H), jnp.float32),
    }


def prepare_params(p):
    """One-time weight fold / pack / cast (runs once, NOT per forward call)."""
    assert VOCAB_PAD == H, "weight slab packing assumes VOCAB_PAD == H rows"
    scale = 1.0 / math.sqrt(HD)

    # fold the 1/sqrt(hd) attention scale into Q; fuse QKV.
    w_qkv = jnp.concatenate([p["wq"] * scale, p["wk"], p["wv"]], axis=1)  # (H, 3H)
    b_qkv = jnp.concatenate([p["bq"] * scale, p["bk"], p["bv"]], axis=1)  # (1, 3H)

    tok_pad = jnp.zeros((VOCAB_PAD, H), jnp.float32).at[:VOCAB, :].set(p["tok_emb"])

    # bf16 weight slab: [tok_emb | w_qkv | wo | w1]  -> (128, 896)
    w_slab = jnp.concatenate([tok_pad, w_qkv, p["wo"], p["w1"]],
                             axis=1).astype(jnp.bfloat16)

    # f32 vector slab (4, 3H): row0=b_qkv, row1=[b1|bo],
    # row2=[b2|ln1_g|ln1_b], row3=[ln2_g|ln2_b|0]
    row1 = jnp.concatenate([p["b1"], p["bo"]], axis=1)
    row2 = jnp.concatenate([p["b2"], p["ln1_g"], p["ln1_b"]], axis=1)
    row3 = jnp.concatenate([p["ln2_g"], p["ln2_b"],
                            jnp.zeros((1, H), jnp.float32)], axis=1)
    vec_slab = jnp.concatenate([b_qkv, row1, row2, row3], axis=0)

    return {
        "w_slab": w_slab,                               # (128, 896) bf16
        "w2": p["w2"].astype(jnp.bfloat16),             # (F, H) bf16
        "vec_slab": vec_slab,                           # (4, 384) f32
        "pos_emb": p["pos_emb"].astype(jnp.float32),    # (S, H) f32
    }


if __name__ == "__main__":
    key = jax.random.PRNGKey(0)
    pkey, ikey = jax.random.split(key)
    params = init_params(pkey)
    prepared = prepare_params(params)       # one-time weight fold / pack / cast

    input_ids = jax.random.randint(ikey, (B, S), 0, VOCAB, dtype=jnp.int32)
    # mask the tail of the second sequence to exercise padding handling
    attention_mask = jnp.array(
        [[1] * S, [1] * (S - 3) + [0] * 3], dtype=jnp.int32)

    fwd = jax.jit(sentence_transformer_forward)
    emb = fwd(input_ids, attention_mask, prepared)
    emb = jax.block_until_ready(emb)

    assert emb.shape == (B, H)
    assert bool(jnp.all(jnp.isfinite(emb)))
    print("KERNEL_OK")
</pallas_src>

<mosaic_0001>
module attributes {stable_mosaic.version = 11 : i64} {
  func.func @_encoder_pool_kernel(%arg0: memref<16x1xi32, #tpu.memory_space<vmem>>, %arg1: memref<2x8xf32, #tpu.memory_space<vmem>>, %arg2: memref<8x128xf32, #tpu.memory_space<vmem>>, %arg3: memref<128x896xbf16, #tpu.memory_space<vmem>>, %arg4: memref<256x128xbf16, #tpu.memory_space<vmem>>, %arg5: memref<4x384xf32, #tpu.memory_space<vmem>>, %arg6: memref<2x128xf32, #tpu.memory_space<vmem>>) attributes {dimension_semantics = [], scalar_prefetch = 0 : i64, scratch_operands = 0 : i64, tpu.core_type = #tpu.core_type<tc>} {
    %c0 = arith.constant 0 : index
    %c0_0 = arith.constant 0 : index
    %0 = vector.load %arg3[%c0, %c0_0] : memref<128x896xbf16, #tpu.memory_space<vmem>>, vector<128x128xbf16>
    %c0_1 = arith.constant 0 : index
    %c128 = arith.constant 128 : index
    %1 = vector.load %arg3[%c0_1, %c128] : memref<128x896xbf16, #tpu.memory_space<vmem>>, vector<128x384xbf16>
    %c0_2 = arith.constant 0 : index
    %c512 = arith.constant 512 : index
    %2 = vector.load %arg3[%c0_2, %c512] : memref<128x896xbf16, #tpu.memory_space<vmem>>, vector<128x128xbf16>
    %c0_3 = arith.constant 0 : index
    %c640 = arith.constant 640 : index
    %3 = vector.load %arg3[%c0_3, %c640] : memref<128x896xbf16, #tpu.memory_space<vmem>>, vector<128x256xbf16>
    %c0_4 = arith.constant 0 : index
    %c0_5 = arith.constant 0 : index
    %4 = vector.load %arg4[%c0_4, %c0_5] : memref<256x128xbf16, #tpu.memory_space<vmem>>, vector<256x128xbf16>
    %c0_6 = arith.constant 0 : index
    %c0_7 = arith.constant 0 : index
    %5 = vector.load %arg5[%c0_6, %c0_7] : memref<4x384xf32, #tpu.memory_space<vmem>>, vector<1x384xf32>
    %c1 = arith.constant 1 : index
    %c0_8 = arith.constant 0 : index
    %6 = vector.load %arg5[%c1, %c0_8] : memref<4x384xf32, #tpu.memory_space<vmem>>, vector<1x256xf32>
    %c1_9 = arith.constant 1 : index
    %c256 = arith.constant 256 : index
    %7 = vector.load %arg5[%c1_9, %c256] : memref<4x384xf32, #tpu.memory_space<vmem>>, vector<1x128xf32>
    %c2 = arith.constant 2 : index
    %c0_10 = arith.constant 0 : index
    %8 = vector.load %arg5[%c2, %c0_10] : memref<4x384xf32, #tpu.memory_space<vmem>>, vector<1x128xf32>
    %c2_11 = arith.constant 2 : index
    %c128_12 = arith.constant 128 : index
    %9 = vector.load %arg5[%c2_11, %c128_12] : memref<4x384xf32, #tpu.memory_space<vmem>>, vector<1x128xf32>
    %c2_13 = arith.constant 2 : index
    %c256_14 = arith.constant 256 : index
    %10 = vector.load %arg5[%c2_13, %c256_14] : memref<4x384xf32, #tpu.memory_space<vmem>>, vector<1x128xf32>
    %c3 = arith.constant 3 : index
    %c0_15 = arith.constant 0 : index
    %11 = vector.load %arg5[%c3, %c0_15] : memref<4x384xf32, #tpu.memory_space<vmem>>, vector<1x128xf32>
    %c3_16 = arith.constant 3 : index
    %c128_17 = arith.constant 128 : index
    %12 = vector.load %arg5[%c3_16, %c128_17] : memref<4x384xf32, #tpu.memory_space<vmem>>, vector<1x128xf32>
    %c0_18 = arith.constant 0 : index
    %c0_19 = arith.constant 0 : index
    %13 = vector.load %arg0[%c0_18, %c0_19] : memref<16x1xi32, #tpu.memory_space<vmem>>, vector<16x1xi32>
    %14 = tpu.iota {dimensions = array<i32: 1>} : vector<16x128xi32>
    %15 = vector.broadcast %13 : vector<16x1xi32> to vector<16x128xi32>
    %16 = arith.cmpi eq, %14, %15 : vector<16x128xi32>
    %17 = arith.extui %16 : vector<16x128xi1> to vector<16x128xi32>
    %18 = arith.sitofp %17 : vector<16x128xi32> to vector<16x128xf32>
    %19 = arith.truncf %18 : vector<16x128xf32> to vector<16x128xbf16>
    %c0_20 = arith.constant 0 : index
    %c0_21 = arith.constant 0 : index
    %20 = vector.load %arg2[%c0_20, %c0_21] : memref<8x128xf32, #tpu.memory_space<vmem>>, vector<8x128xf32>
    %21 = tpu.concatenate %20, %20 in 0 : vector<8x128xf32>, vector<8x128xf32> -> vector<16x128xf32>
    %cst = arith.constant dense<0.000000e+00> : vector<16x128xf32>
    %22 = tpu.matmul %19, %0, %cst {dimension_numbers = #tpu.dot_dimension_numbers<[1], [0], [0], [1], [0, 0, 1, 1], [], []>} : vector<16x128xbf16>, vector<128x128xbf16>, vector<16x128xf32> -> vector<16x128xf32>
    %23 = arith.addf %22, %21 : vector<16x128xf32>
    %24 = arith.truncf %23 : vector<16x128xf32> to vector<16x128xbf16>
    %cst_22 = arith.constant dense<0.000000e+00> : vector<16x384xf32>
    %25 = tpu.matmul %24, %1, %cst_22 {dimension_numbers = #tpu.dot_dimension_numbers<[1], [0], [0], [1], [0, 0, 1, 1], [], []>} : vector<16x128xbf16>, vector<128x384xbf16>, vector<16x384xf32> -> vector<16x384xf32>
    %26 = vector.broadcast %5 : vector<1x384xf32> to vector<16x384xf32>
    %27 = arith.addf %25, %26 : vector<16x384xf32>
    %28 = vector.extract_strided_slice %27 {offsets = [0, 0], sizes = [16, 128], strides = [1, 1]} : vector<16x384xf32> to vector<16x128xf32>
    %29 = vector.extract_strided_slice %27 {offsets = [0, 128], sizes = [16, 128], strides = [1, 1]} : vector<16x384xf32> to vector<16x128xf32>
    %30 = vector.extract_strided_slice %27 {offsets = [0, 256], sizes = [16, 128], strides = [1, 1]} : vector<16x384xf32> to vector<16x128xf32>
    %c0_23 = arith.constant 0 : index
    %c0_24 = arith.constant 0 : index
    %31 = vector.load %arg1[%c0_23, %c0_24] : memref<2x8xf32, #tpu.memory_space<vmem>>, vector<1x8xf32>
    %cst_25 = arith.constant 1.000000e+00 : f32
    %32 = vector.broadcast %cst_25 : f32 to vector<1x8xf32>
    %33 = arith.subf %31, %32 : vector<1x8xf32>
    %cst_26 = arith.constant 1.000000e+09 : f32
    %34 = vector.broadcast %cst_26 : f32 to vector<1x8xf32>
    %35 = arith.mulf %33, %34 : vector<1x8xf32>
    %36 = vector.extract_strided_slice %28 {offsets = [0, 0], sizes = [8, 64], strides = [1, 1]} : vector<16x128xf32> to vector<8x64xf32>
    %37 = arith.truncf %36 : vector<8x64xf32> to vector<8x64xbf16>
    %38 = vector.extract_strided_slice %29 {offsets = [0, 0], sizes = [8, 64], strides = [1, 1]} : vector<16x128xf32> to vector<8x64xf32>
    %39 = tpu.transpose %38, [1, 0] : vector<8x64xf32> -> vector<64x8xf32>
    %40 = arith.truncf %39 : vector<64x8xf32> to vector<64x8xbf16>
    %41 = vector.extract_strided_slice %30 {offsets = [0, 0], sizes = [8, 64], strides = [1, 1]} : vector<16x128xf32> to vector<8x64xf32>
    %42 = arith.truncf %41 : vector<8x64xf32> to vector<8x64xbf16>
    %cst_27 = arith.constant dense<0.000000e+00> : vector<8x8xf32>
    %43 = tpu.matmul %37, %40, %cst_27 {dimension_numbers = #tpu.dot_dimension_numbers<[1], [0], [0], [1], [0, 0, 1, 1], [], []>} : vector<8x64xbf16>, vector<64x8xbf16>, vector<8x8xf32> -> vector<8x8xf32>
    %44 = vector.broadcast %35 : vector<1x8xf32> to vector<8x8xf32>
    %45 = arith.addf %43, %44 : vector<8x8xf32>
    %cst_28 = arith.constant dense<0xFF800000> : vector<8xf32>
    %46 = vector.multi_reduction <maximumf>, %45, %cst_28 [1] : vector<8x8xf32> to vector<8xf32>
    %47 = vector.shape_cast %46 : vector<8xf32> to vector<8x1xf32>
    %48 = vector.broadcast %47 : vector<8x1xf32> to vector<8x8xf32>
    %49 = arith.subf %45, %48 : vector<8x8xf32>
    %50 = math.exp %49 : vector<8x8xf32>
    %cst_29 = arith.constant dense<0.000000e+00> : vector<8xf32>
    %51 = vector.multi_reduction <add>, %50, %cst_29 [1] : vector<8x8xf32> to vector<8xf32>
    %52 = vector.shape_cast %51 : vector<8xf32> to vector<8x1xf32>
    %53 = vector.broadcast %52 : vector<8x1xf32> to vector<8x8xf32>
    %54 = arith.divf %50, %53 : vector<8x8xf32>
    %55 = arith.truncf %54 : vector<8x8xf32> to vector<8x8xbf16>
    %cst_30 = arith.constant dense<0.000000e+00> : vector<8x64xf32>
    %56 = tpu.matmul %55, %42, %cst_30 {dimension_numbers = #tpu.dot_dimension_numbers<[1], [0], [0], [1], [0, 0, 1, 1], [], []>} : vector<8x8xbf16>, vector<8x64xbf16>, vector<8x64xf32> -> vector<8x64xf32>
    %57 = vector.extract_strided_slice %28 {offsets = [0, 64], sizes = [8, 64], strides = [1, 1]} : vector<16x128xf32> to vector<8x64xf32>
    %58 = arith.truncf %57 : vector<8x64xf32> to vector<8x64xbf16>
    %59 = vector.extract_strided_slice %29 {offsets = [0, 64], sizes = [8, 64], strides = [1, 1]} : vector<16x128xf32> to vector<8x64xf32>
    %60 = tpu.transpose %59, [1, 0] : vector<8x64xf32> -> vector<64x8xf32>
    %61 = arith.truncf %60 : vector<64x8xf32> to vector<64x8xbf16>
    %62 = vector.extract_strided_slice %30 {offsets = [0, 64], sizes = [8, 64], strides = [1, 1]} : vector<16x128xf32> to vector<8x64xf32>
    %63 = arith.truncf %62 : vector<8x64xf32> to vector<8x64xbf16>
    %cst_31 = arith.constant dense<0.000000e+00> : vector<8x8xf32>
    %64 = tpu.matmul %58, %61, %cst_31 {dimension_numbers = #tpu.dot_dimension_numbers<[1], [0], [0], [1], [0, 0, 1, 1], [], []>} : vector<8x64xbf16>, vector<64x8xbf16>, vector<8x8xf32> -> vector<8x8xf32>
    %65 = vector.broadcast %35 : vector<1x8xf32> to vector<8x8xf32>
    %66 = arith.addf %64, %65 : vector<8x8xf32>
    %cst_32 = arith.constant dense<0xFF800000> : vector<8xf32>
    %67 = vector.multi_reduction <maximumf>, %66, %cst_32 [1] : vector<8x8xf32> to vector<8xf32>
    %68 = vector.shape_cast %67 : vector<8xf32> to vector<8x1xf32>
    %69 = vector.broadcast %68 : vector<8x1xf32> to vector<8x8xf32>
    %70 = arith.subf %66, %69 : vector<8x8xf32>
    %71 = math.exp %70 : vector<8x8xf32>
    %cst_33 = arith.constant dense<0.000000e+00> : vector<8xf32>
    %72 = vector.multi_reduction <add>, %71, %cst_33 [1] : vector<8x8xf32> to vector<8xf32>
    %73 = vector.shape_cast %72 : vector<8xf32> to vector<8x1xf32>
    %74 = vector.broadcast %73 : vector<8x1xf32> to vector<8x8xf32>
    %75 = arith.divf %71, %74 : vector<8x8xf32>
    %76 = arith.truncf %75 : vector<8x8xf32> to vector<8x8xbf16>
    %cst_34 = arith.constant dense<0.000000e+00> : vector<8x64xf32>
    %77 = tpu.matmul %76, %63, %cst_34 {dimension_numbers = #tpu.dot_dimension_numbers<[1], [0], [0], [1], [0, 0, 1, 1], [], []>} : vector<8x8xbf16>, vector<8x64xbf16>, vector<8x64xf32> -> vector<8x64xf32>
    %78 = tpu.concatenate %56, %77 in 1 : vector<8x64xf32>, vector<8x64xf32> -> vector<8x128xf32>
    %c1_35 = arith.constant 1 : index
    %c0_36 = arith.constant 0 : index
    %79 = vector.load %arg1[%c1_35, %c0_36] : memref<2x8xf32, #tpu.memory_space<vmem>>, vector<1x8xf32>
    %cst_37 = arith.constant 1.000000e+00 : f32
    %80 = vector.broadcast %cst_37 : f32 to vector<1x8xf32>
    %81 = arith.subf %79, %80 : vector<1x8xf32>
    %cst_38 = arith.constant 1.000000e+09 : f32
    %82 = vector.broadcast %cst_38 : f32 to vector<1x8xf32>
    %83 = arith.mulf %81, %82 : vector<1x8xf32>
    %84 = vector.extract_strided_slice %28 {offsets = [8, 0], sizes = [8, 64], strides = [1, 1]} : vector<16x128xf32> to vector<8x64xf32>
    %85 = arith.truncf %84 : vector<8x64xf32> to vector<8x64xbf16>
    %86 = vector.extract_strided_slice %29 {offsets = [8, 0], sizes = [8, 64], strides = [1, 1]} : vector<16x128xf32> to vector<8x64xf32>
    %87 = tpu.transpose %86, [1, 0] : vector<8x64xf32> -> vector<64x8xf32>
    %88 = arith.truncf %87 : vector<64x8xf32> to vector<64x8xbf16>
    %89 = vector.extract_strided_slice %30 {offsets = [8, 0], sizes = [8, 64], strides = [1, 1]} : vector<16x128xf32> to vector<8x64xf32>
    %90 = arith.truncf %89 : vector<8x64xf32> to vector<8x64xbf16>
    %cst_39 = arith.constant dense<0.000000e+00> : vector<8x8xf32>
    %91 = tpu.matmul %85, %88, %cst_39 {dimension_numbers = #tpu.dot_dimension_numbers<[1], [0], [0], [1], [0, 0, 1, 1], [], []>} : vector<8x64xbf16>, vector<64x8xbf16>, vector<8x8xf32> -> vector<8x8xf32>
    %92 = vector.broadcast %83 : vector<1x8xf32> to vector<8x8xf32>
    %93 = arith.addf %91, %92 : vector<8x8xf32>
    %cst_40 = arith.constant dense<0xFF800000> : vector<8xf32>
    %94 = vector.multi_reduction <maximumf>, %93, %cst_40 [1] : vector<8x8xf32> to vector<8xf32>
    %95 = vector.shape_cast %94 : vector<8xf32> to vector<8x1xf32>
    %96 = vector.broadcast %95 : vector<8x1xf32> to vector<8x8xf32>
    %97 = arith.subf %93, %96 : vector<8x8xf32>
    %98 = math.exp %97 : vector<8x8xf32>
    %cst_41 = arith.constant dense<0.000000e+00> : vector<8xf32>
    %99 = vector.multi_reduction <add>, %98, %cst_41 [1] : vector<8x8xf32> to vector<8xf32>
    %100 = vector.shape_cast %99 : vector<8xf32> to vector<8x1xf32>
    %101 = vector.broadcast %100 : vector<8x1xf32> to vector<8x8xf32>
    %102 = arith.divf %98, %101 : vector<8x8xf32>
    %103 = arith.truncf %102 : vector<8x8xf32> to vector<8x8xbf16>
    %cst_42 = arith.constant dense<0.000000e+00> : vector<8x64xf32>
    %104 = tpu.matmul %103, %90, %cst_42 {dimension_numbers = #tpu.dot_dimension_numbers<[1], [0], [0], [1], [0, 0, 1, 1], [], []>} : vector<8x8xbf16>, vector<8x64xbf16>, vector<8x64xf32> -> vector<8x64xf32>
    %105 = vector.extract_strided_slice %28 {offsets = [8, 64], sizes = [8, 64], strides = [1, 1]} : vector<16x128xf32> to vector<8x64xf32>
    %106 = arith.truncf %105 : vector<8x64xf32> to vector<8x64xbf16>
    %107 = vector.extract_strided_slice %29 {offsets = [8, 64], sizes = [8, 64], strides = [1, 1]} : vector<16x128xf32> to vector<8x64xf32>
    %108 = tpu.transpose %107, [1, 0] : vector<8x64xf32> -> vector<64x8xf32>
    %109 = arith.truncf %108 : vector<64x8xf32> to vector<64x8xbf16>
    %110 = vector.extract_strided_slice %30 {offsets = [8, 64], sizes = [8, 64], strides = [1, 1]} : vector<16x128xf32> to vector<8x64xf32>
    %111 = arith.truncf %110 : vector<8x64xf32> to vector<8x64xbf16>
    %cst_43 = arith.constant dense<0.000000e+00> : vector<8x8xf32>
    %112 = tpu.matmul %106, %109, %cst_43 {dimension_numbers = #tpu.dot_dimension_numbers<[1], [0], [0], [1], [0, 0, 1, 1], [], []>} : vector<8x64xbf16>, vector<64x8xbf16>, vector<8x8xf32> -> vector<8x8xf32>
    %113 = vector.broadcast %83 : vector<1x8xf32> to vector<8x8xf32>
    %114 = arith.addf %112, %113 : vector<8x8xf32>
    %cst_44 = arith.constant dense<0xFF800000> : vector<8xf32>
    %115 = vector.multi_reduction <maximumf>, %114, %cst_44 [1] : vector<8x8xf32> to vector<8xf32>
    %116 = vector.shape_cast %115 : vector<8xf32> to vector<8x1xf32>
    %117 = vector.broadcast %116 : vector<8x1xf32> to vector<8x8xf32>
    %118 = arith.subf %114, %117 : vector<8x8xf32>
    %119 = math.exp %118 : vector<8x8xf32>
    %cst_45 = arith.constant dense<0.000000e+00> : vector<8xf32>
    %120 = vector.multi_reduction <add>, %119, %cst_45 [1] : vector<8x8xf32> to vector<8xf32>
    %121 = vector.shape_cast %120 : vector<8xf32> to vector<8x1xf32>
    %122 = vector.broadcast %121 : vector<8x1xf32> to vector<8x8xf32>
    %123 = arith.divf %119, %122 : vector<8x8xf32>
    %124 = arith.truncf %123 : vector<8x8xf32> to vector<8x8xbf16>
    %cst_46 = arith.constant dense<0.000000e+00> : vector<8x64xf32>
    %125 = tpu.matmul %124, %111, %cst_46 {dimension_numbers = #tpu.dot_dimension_numbers<[1], [0], [0], [1], [0, 0, 1, 1], [], []>} : vector<8x8xbf16>, vector<8x64xbf16>, vector<8x64xf32> -> vector<8x64xf32>
    %126 = tpu.concatenate %104, %125 in 1 : vector<8x64xf32>, vector<8x64xf32> -> vector<8x128xf32>
    %127 = tpu.concatenate %78, %126 in 0 : vector<8x128xf32>, vector<8x128xf32> -> vector<16x128xf32>
    %128 = arith.truncf %127 : vector<16x128xf32> to vector<16x128xbf16>
    %cst_47 = arith.constant dense<0.000000e+00> : vector<16x128xf32>
    %129 = tpu.matmul %128, %2, %cst_47 {dimension_numbers = #tpu.dot_dimension_numbers<[1], [0], [0], [1], [0, 0, 1, 1], [], []>} : vector<16x128xbf16>, vector<128x128xbf16>, vector<16x128xf32> -> vector<16x128xf32>
    %130 = vector.broadcast %7 : vector<1x128xf32> to vector<16x128xf32>
    %131 = arith.addf %129, %130 : vector<16x128xf32>
    %132 = arith.addf %23, %131 : vector<16x128xf32>
    %cst_48 = arith.constant dense<0.000000e+00> : vector<16xf32>
    %133 = vector.multi_reduction <add>, %132, %cst_48 [1] : vector<16x128xf32> to vector<16xf32>
    %134 = vector.shape_cast %133 : vector<16xf32> to vector<16x1xf32>
    %cst_49 = arith.constant 1.280000e+02 : f32
    %135 = vector.broadcast %cst_49 : f32 to vector<16x1xf32>
    %136 = arith.divf %134, %135 : vector<16x1xf32>
    %137 = vector.broadcast %136 : vector<16x1xf32> to vector<16x128xf32>
    %138 = arith.subf %132, %137 : vector<16x128xf32>
    %139 = arith.mulf %138, %138 : vector<16x128xf32>
    %cst_50 = arith.constant dense<0.000000e+00> : vector<16xf32>
    %140 = vector.multi_reduction <add>, %139, %cst_50 [1] : vector<16x128xf32> to vector<16xf32>
    %141 = vector.shape_cast %140 : vector<16xf32> to vector<16x1xf32>
    %cst_51 = arith.constant 1.280000e+02 : f32
    %142 = vector.broadcast %cst_51 : f32 to vector<16x1xf32>
    %143 = arith.divf %141, %142 : vector<16x1xf32>
    %144 = vector.broadcast %136 : vector<16x1xf32> to vector<16x128xf32>
    %145 = arith.subf %132, %144 : vector<16x128xf32>
    %cst_52 = arith.constant 9.99999974E-6 : f32
    %146 = vector.broadcast %cst_52 : f32 to vector<16x1xf32>
    %147 = arith.addf %143, %146 : vector<16x1xf32>
    %148 = math.rsqrt %147 : vector<16x1xf32>
    %149 = vector.broadcast %148 : vector<16x1xf32> to vector<16x128xf32>
    %150 = arith.mulf %145, %149 : vector<16x128xf32>
    %151 = vector.broadcast %9 : vector<1x128xf32> to vector<16x128xf32>
    %152 = arith.mulf %150, %151 : vector<16x128xf32>
    %153 = vector.broadcast %10 : vector<1x128xf32> to vector<16x128xf32>
    %154 = arith.addf %152, %153 : vector<16x128xf32>
    %155 = arith.truncf %154 : vector<16x128xf32> to vector<16x128xbf16>
    %cst_53 = arith.constant dense<0.000000e+00> : vector<16x256xf32>
    %156 = tpu.matmul %155, %3, %cst_53 {dimension_numbers = #tpu.dot_dimension_numbers<[1], [0], [0], [1], [0, 0, 1, 1], [], []>} : vector<16x128xbf16>, vector<128x256xbf16>, vector<16x256xf32> -> vector<16x256xf32>
    %157 = vector.broadcast %6 : vector<1x256xf32> to vector<16x256xf32>
    %158 = arith.addf %156, %157 : vector<16x256xf32>
    %159 = arith.mulf %158, %158 : vector<16x256xf32>
    %160 = arith.mulf %158, %159 : vector<16x256xf32>
    %cst_54 = arith.constant 4.471500e-02 : f32
    %161 = vector.broadcast %cst_54 : f32 to vector<16x256xf32>
    %162 = arith.mulf %161, %160 : vector<16x256xf32>
    %163 = arith.addf %158, %162 : vector<16x256xf32>
    %cst_55 = arith.constant 0.797884583 : f32
    %164 = vector.broadcast %cst_55 : f32 to vector<16x256xf32>
    %165 = arith.mulf %164, %163 : vector<16x256xf32>
    %166 = math.tanh %165 : vector<16x256xf32>
    %cst_56 = arith.constant 1.000000e+00 : f32
    %167 = vector.broadcast %cst_56 : f32 to vector<16x256xf32>
    %168 = arith.addf %167, %166 : vector<16x256xf32>
    %cst_57 = arith.constant 5.000000e-01 : f32
    %169 = vector.broadcast %cst_57 : f32 to vector<16x256xf32>
    %170 = arith.mulf %169, %168 : vector<16x256xf32>
    %171 = arith.mulf %158, %170 : vector<16x256xf32>
    %172 = arith.truncf %171 : vector<16x256xf32> to vector<16x256xbf16>
    %cst_58 = arith.constant dense<0.000000e+00> : vector<16x128xf32>
    %173 = tpu.matmul %172, %4, %cst_58 {dimension_numbers = #tpu.dot_dimension_numbers<[1], [0], [0], [1], [0, 0, 1, 1], [], []>} : vector<16x256xbf16>, vector<256x128xbf16>, vector<16x128xf32> -> vector<16x128xf32>
    %174 = vector.broadcast %8 : vector<1x128xf32> to vector<16x128xf32>
    %175 = arith.addf %173, %174 : vector<16x128xf32>
    %176 = arith.addf %154, %175 : vector<16x128xf32>
    %cst_59 = arith.constant dense<0.000000e+00> : vector<16xf32>
    %177 = vector.multi_reduction <add>, %176, %cst_59 [1] : vector<16x128xf32> to vector<16xf32>
    %178 = vector.shape_cast %177 : vector<16xf32> to vector<16x1xf32>
    %cst_60 = arith.constant 1.280000e+02 : f32
    %179 = vector.broadcast %cst_60 : f32 to vector<16x1xf32>
    %180 = arith.divf %178, %179 : vector<16x1xf32>
    %181 = vector.broadcast %180 : vector<16x1xf32> to vector<16x128xf32>
    %182 = arith.subf %176, %181 : vector<16x128xf32>
    %183 = arith.mulf %182, %182 : vector<16x128xf32>
    %cst_61 = arith.constant dense<0.000000e+00> : vector<16xf32>
    %184 = vector.multi_reduction <add>, %183, %cst_61 [1] : vector<16x128xf32> to vector<16xf32>
    %185 = vector.shape_cast %184 : vector<16xf32> to vector<16x1xf32>
    %cst_62 = arith.constant 1.280000e+02 : f32
    %186 = vector.broadcast %cst_62 : f32 to vector<16x1xf32>
    %187 = arith.divf %185, %186 : vector<16x1xf32>
    %188 = vector.broadcast %180 : vector<16x1xf32> to vector<16x128xf32>
    %189 = arith.subf %176, %188 : vector<16x128xf32>
    %cst_63 = arith.constant 9.99999974E-6 : f32
    %190 = vector.broadcast %cst_63 : f32 to vector<16x1xf32>
    %191 = arith.addf %187, %190 : vector<16x1xf32>
    %192 = math.rsqrt %191 : vector<16x1xf32>
    %193 = vector.broadcast %192 : vector<16x1xf32> to vector<16x128xf32>
    %194 = arith.mulf %189, %193 : vector<16x128xf32>
    %195 = vector.broadcast %11 : vector<1x128xf32> to vector<16x128xf32>
    %196 = arith.mulf %194, %195 : vector<16x128xf32>
    %197 = vector.broadcast %12 : vector<1x128xf32> to vector<16x128xf32>
    %198 = arith.addf %196, %197 : vector<16x128xf32>
    %c0_64 = arith.constant 0 : index
    %c0_65 = arith.constant 0 : index
    %199 = vector.load %arg1[%c0_64, %c0_65] : memref<2x8xf32, #tpu.memory_space<vmem>>, vector<1x8xf32>
    %cst_66 = arith.constant dense<0.000000e+00> : vector<1xf32>
    %200 = vector.multi_reduction <add>, %199, %cst_66 [1] : vector<1x8xf32> to vector<1xf32>
    %201 = vector.shape_cast %200 : vector<1xf32> to vector<1x1xf32>
    %cst_67 = arith.constant 1.000000e+00 : f32
    %202 = vector.broadcast %cst_67 : f32 to vector<1x1xf32>
    %203 = arith.maximumf %201, %202 : vector<1x1xf32>
    %204 = vector.extract_strided_slice %198 {offsets = [0, 0], sizes = [8, 128], strides = [1, 1]} : vector<16x128xf32> to vector<8x128xf32>
    %cst_68 = arith.constant dense<0.000000e+00> : vector<1x128xf32>
    %205 = tpu.matmul %199, %204, %cst_68 {dimension_numbers = #tpu.dot_dimension_numbers<[1], [0], [0], [1], [0, 0, 1, 1], [], []>} : vector<1x8xf32>, vector<8x128xf32>, vector<1x128xf32> -> vector<1x128xf32>
    %206 = vector.broadcast %203 : vector<1x1xf32> to vector<1x128xf32>
    %207 = arith.divf %205, %206 : vector<1x128xf32>
    %c0_69 = arith.constant 0 : index
    %c0_70 = arith.constant 0 : index
    %208 = vector.load %arg6[%c0_69, %c0_70] : memref<2x128xf32, #tpu.memory_space<vmem>>, vector<1x128xf32>
    tpu.vector_store %arg6[%c0_69, %c0_70], %207 {strides = array<i32>} : memref<2x128xf32, #tpu.memory_space<vmem>>, vector<1x128xf32>,
    %c1_71 = arith.constant 1 : index
    %c0_72 = arith.constant 0 : index
    %209 = vector.load %arg1[%c1_71, %c0_72] : memref<2x8xf32, #tpu.memory_space<vmem>>, vector<1x8xf32>
    %cst_73 = arith.constant dense<0.000000e+00> : vector<1xf32>
    %210 = vector.multi_reduction <add>, %209, %cst_73 [1] : vector<1x8xf32> to vector<1xf32>
    %211 = vector.shape_cast %210 : vector<1xf32> to vector<1x1xf32>
    %cst_74 = arith.constant 1.000000e+00 : f32
    %212 = vector.broadcast %cst_74 : f32 to vector<1x1xf32>
    %213 = arith.maximumf %211, %212 : vector<1x1xf32>
    %214 = vector.extract_strided_slice %198 {offsets = [8, 0], sizes = [8, 128], strides = [1, 1]} : vector<16x128xf32> to vector<8x128xf32>
    %cst_75 = arith.constant dense<0.000000e+00> : vector<1x128xf32>
    %215 = tpu.matmul %209, %214, %cst_75 {dimension_numbers = #tpu.dot_dimension_numbers<[1], [0], [0], [1], [0, 0, 1, 1], [], []>} : vector<1x8xf32>, vector<8x128xf32>, vector<1x128xf32> -> vector<1x128xf32>
    %216 = vector.broadcast %213 : vector<1x1xf32> to vector<1x128xf32>
    %217 = arith.divf %215, %216 : vector<1x128xf32>
    %c1_76 = arith.constant 1 : index
    %c0_77 = arith.constant 0 : index
    %218 = vector.load %arg6[%c1_76, %c0_77] : memref<2x128xf32, #tpu.memory_space<vmem>>, vector<1x128xf32>
    tpu.vector_store %arg6[%c1_76, %c0_77], %217 {strides = array<i32>} : memref<2x128xf32, #tpu.memory_space<vmem>>, vector<1x128xf32>,
    return
  }
}

</mosaic_0001>

<bundles_post_ra>
// kernel: sentence_transformer_forward.1
= control target key start
LH: loop header
LB: loop body
LE: loop exit
PB: predicated region body
PF: predicated region fallthrough
CT: control target
= control target key end

     0   :  { %11 = vsyncpa [#allocation3], 0  ;;  %s2169_s0 = inlined_call_operand.vmem [shape: s32[16,1], index: 0, kind: input, shape index: {}]   ;;  %s2170_s1 = inlined_call_operand.vmem [shape: f32[2,8], index: 1, kind: input, shape index: {}]   ;;  %s2171_s2 = inlined_call_operand.vmem [shape: f32[8,128], index: 2, kind: input, shape index: {}]   ;;  %s2172_s3 = inlined_call_operand.hbm [shape: bf16[128,896], index: 3, kind: input, shape index: {}]   ;;  %s2173_s4 = inlined_call_operand.hbm [shape: bf16[256,128], index: 4, kind: input, shape index: {}]   ;;  %s2174_s5 = inlined_call_operand.vmem [shape: f32[4,384], index: 5, kind: input, shape index: {}]   ;;  %s2175_s6 = inlined_call_operand.hbm [shape: f32[2,128], index: 6, kind: output, shape index: {}]  }
   0x1   :  { %12 = vsyncpa [#allocation6], 0 }
   0x2   :  { %13 = vsyncpa [#allocation4], 0  ;;  %s24_s23 = sshll.u32 %s2172_s3, 4  ;;  %s1978_s24 = smov [#allocation2]   ;;  %s25_s23 = int_to_ptr.hbm [resolvable:$true] %s24_s23 }
   0x3   :  { %s26_s25 = sshll.u32 %s1978_s24, 4  ;;  %s37_s28 = sshll.u32 %s2173_s4, 4  ;;  %s27_s25 = int_to_ptr.vmem [resolvable:$true] %s26_s25  ;;  %s38_s28 = int_to_ptr.hbm [resolvable:$true] %s37_s28 }
   0x4   :  { %s1979_s29 = smov 448   ;;  %s1980_s30 = smov 28  }
   0x5   :  { %32 = dma.hbm_to_vmem [thread:$0]  %s25_s23, 7168, %s27_s25, [#allocation3], %s1979_s29, %s1979_s29, %s1980_s30  }
   0x6   :  { %s1981_s7 = smov [#allocation5]   ;;  %s1982_s9 = smov 64  }
   0x7   :  { %s39_s8 = sshll.u32 %s1981_s7, 4  ;;  %s1983_s10 = smov 4   ;;  %s40_s8 = int_to_ptr.vmem [resolvable:$true] %s39_s8 }
   0x8   :  { %45 = dma.hbm_to_vmem [thread:$0]  %s38_s28, 2048, %s40_s8, [#allocation6], %s1982_s9, %s1982_s9, %s1983_s10  }
   0x9   :  { %1972 = dma.done.wait [#allocation3], 7168  }
   0xa   :  { %1973 = vsyncadd [#allocation3], 4294960128 }
   0xb   :  { %1974 = dma.done.wait [#allocation6], 2048  }
   0xc   :  { %1975 = vsyncadd [#allocation6], 4294965248  ;;  %v1984_v0 = vmov 0   ;;  %v178_v1 = vld [vmem:[%s2169_s0] sm:$0xff]  ;;  %v1448_v2 = vld [vmem:[#allocation2 + $0x188] sm:$0xf] }
   0xd   :  { %1803 = vset.pattern.permute.xlu0 %v1984_v0  ;;  %v1727_v3 = vld [vmem:[#allocation2 + $0x1a0] sm:$0xf0]  ;;  %v1444_v4 = vld [vmem:[#allocation2 + $0x150] sm:$0xf]  ;;  %v1726_v5 = vld [vmem:[#allocation2 + $0x168] sm:$0xf0] }
   0xe   :  { %183 = vperm.xlu0 %1803, %v178_v1   ;;  %v1449_v6 = vor.u32 %v1727_v3, %v1448_v2  ;;  %v1440_v7 = vld [vmem:[#allocation2 + $0x118] sm:$0xf]  ;;  %v1725_v8 = vld [vmem:[#allocation2 + $0x130] sm:$0xf0]  ;;  %v1445_v9 = vor.u32 %v1726_v5, %v1444_v4  ;;  %v179_v10 = vld [vmem:[%s2169_s0 + $0x8] sm:$0xff]  ;;  %vm524_vm3 = vcmask 1043456  }
   0xf   :  { %v1441_v11 = vor.u32 %v1725_v8, %v1440_v7  ;;  %v1436_v12 = vld [vmem:[#allocation2 + $0xe0] sm:$0xf]  ;;  %v1724_v13 = vld [vmem:[#allocation2 + $0xf8] sm:$0xf0]  ;;  %v1432_v15 = vld [vmem:[#allocation2 + $0xa8] sm:$0xf] }
  0x10   :  { %244 = vmatpush.bf16.msra.mxu0 %v1449_v6  ;;  %v1437_v14 = vor.u32 %v1724_v13, %v1436_v12  ;;  %v1723_v16 = vld [vmem:[#allocation2 + $0xc0] sm:$0xf0]  ;;  %v1428_v18 = vld [vmem:[#allocation2 + $0x70] sm:$0xf]  ;;  %v1722_v19 = vld [vmem:[#allocation2 + $0x88] sm:$0xf0] }
  0x11   :  { %v1433_v17 = vor.u32 %v1723_v16, %v1432_v15  ;;  %v1429_v20 = vor.u32 %v1722_v19, %v1428_v18  ;;  %v1424_v21 = vld [vmem:[#allocation2 + $0x38] sm:$0xf]  ;;  %v1721_v22 = vld [vmem:[#allocation2 + $0x50] sm:$0xf0]  ;;  %v1420_v24 = vld [vmem:[#allocation2] sm:$0xf] }
  0x12   :  { %v1425_v23 = vor.u32 %v1721_v22, %v1424_v21  ;;  %v1720_v25 = vld [vmem:[#allocation2 + $0x18] sm:$0xf0]  ;;  %v1538_v27 = vld [vmem:[#allocation2 + $0x18c] sm:$0xf]  ;;  %v1750_v28 = vld [vmem:[#allocation2 + $0x1a4] sm:$0xf0] }
  0x13   :  { %v1421_v26 = vor.u32 %v1720_v25, %v1420_v24  ;;  %v1749_v29 = vld [vmem:[#allocation2 + $0x190] sm:$0xf]  ;;  %v1539_v30 = vor.u32 %v1750_v28, %v1538_v27  ;;  %v1540_v31 = vld [vmem:[#allocation2 + $0x1a8] sm:$0xf0]  ;;  %v1546_v32 = vld [vmem:[#allocation2 + $0x194] sm:$0xf] }
  0x14   :  { %245 = vmatpush.bf16.msra.mxu0 %v1445_v9  ;;  %v1751_v33 = vld [vmem:[#allocation2 + $0x1ac] sm:$0xf0]  ;;  %v1543_v34 = vor.u32 %v1749_v29, %v1540_v31  ;;  %v1526_v36 = vld [vmem:[#allocation2 + $0x154] sm:$0xf]  ;;  %v1746_v38 = vld [vmem:[#allocation2 + $0x158] sm:$0xf]  ;;  %v180_v9 = vlaneseq }
  0x15   :  { %v1547_v35 = vor.u32 %v1751_v33, %v1546_v32  ;;  %v1747_v37 = vld [vmem:[#allocation2 + $0x16c] sm:$0xf0]  ;;  %394 = vmatpush.bf16.msra.mxu1 %v1539_v30  ;;  %v1528_v40 = vld [vmem:[#allocation2 + $0x170] sm:$0xf0]  ;;  %v1534_v41 = vld [vmem:[#allocation2 + $0x15c] sm:$0xf] }
  0x16   :  { %186 = vperm.xlu0 %1803, %v179_v10   ;;  %v1527_v39 = vor.u32 %v1747_v37, %v1526_v36  ;;  %v1748_v42 = vld [vmem:[#allocation2 + $0x174] sm:$0xf0]  ;;  %408 = vmatpush.bf16.msra.mxu2 %v1543_v34  ;;  %v1531_v43 = vor.u32 %v1746_v38, %v1528_v40  ;;  %v1514_v45 = vld [vmem:[#allocation2 + $0x11c] sm:$0xf]  ;;  %v1743_v47 = vld [vmem:[#allocation2 + $0x120] sm:$0xf] }
  0x17   :  { %422 = vmatpush.bf16.msra.mxu3 %v1547_v35  ;;  %v1535_v44 = vor.u32 %v1748_v42, %v1534_v41  ;;  %v1744_v46 = vld [vmem:[#allocation2 + $0x134] sm:$0xf0]  ;;  %v1516_v48 = vld [vmem:[#allocation2 + $0x138] sm:$0xf0]  ;;  %v1522_v49 = vld [vmem:[#allocation2 + $0x124] sm:$0xf] }
  0x18   :  { %246 = vmatpush.bf16.msra.mxu0 %v1441_v11  ;;  %v1745_v50 = vld [vmem:[#allocation2 + $0x13c] sm:$0xf0]  ;;  %v1515_v51 = vor.u32 %v1744_v46, %v1514_v45  ;;  %v1519_v52 = vor.u32 %v1743_v47, %v1516_v48  ;;  %v1502_v54 = vld [vmem:[#allocation2 + $0xe4] sm:$0xf]  ;;  %v1740_v56 = vld [vmem:[#allocation2 + $0xe8] sm:$0xf] }
  0x19   :  { %395 = vmatpush.bf16.msra.mxu1 %v1527_v39  ;;  %v1523_v53 = vor.u32 %v1745_v50, %v1522_v49  ;;  %v1741_v55 = vld [vmem:[#allocation2 + $0xfc] sm:$0xf0]  ;;  %v1504_v57 = vld [vmem:[#allocation2 + $0x100] sm:$0xf0]  ;;  %v1510_v58 = vld [vmem:[#allocation2 + $0xec] sm:$0xf] }
  0x1a   :  { %409 = vmatpush.bf16.msra.mxu2 %v1531_v43  ;;  %v1742_v59 = vld [vmem:[#allocation2 + $0x104] sm:$0xf0]  ;;  %v1503_v60 = vor.u32 %v1741_v55, %v1502_v54  ;;  %v1507_v61 = vor.u32 %v1740_v56, %v1504_v57  ;;  %v1490_v63 = vld [vmem:[#allocation2 + $0xac] sm:$0xf]  ;;  %v1737_v1 = vld [vmem:[#allocation2 + $0xb0] sm:$0xf] }
  0x1b   :  { %423 = vmatpush.bf16.msra.mxu3 %v1535_v44  ;;  %v1511_v62 = vor.u32 %v1742_v59, %v1510_v58  ;;  %v1738_v0 = vld [vmem:[#allocation2 + $0xc4] sm:$0xf0]  ;;  %v1492_v2 = vld [vmem:[#allocation2 + $0xc8] sm:$0xf0]  ;;  %v1498_v3 = vld [vmem:[#allocation2 + $0xb4] sm:$0xf] }
  0x1c   :  { %247 = vmatpush.bf16.msra.mxu0 %v1437_v14  ;;  %v1739_v4 = vld [vmem:[#allocation2 + $0xcc] sm:$0xf0]  ;;  %v1491_v5 = vor.u32 %v1738_v0, %v1490_v63  ;;  %v1495_v6 = vor.u32 %v1737_v1, %v1492_v2  ;;  %v181_v10 = vand.u32 127, %v180_v9  ;;  %v1985_v12 = vmov 1.0|1.0   ;;  %v195_v41 = vld [vmem:[%s2171_s2] sm:$0xff] }
  0x1d   :  { %396 = vmatpush.bf16.msra.mxu1 %v1515_v51  ;;  %v1499_v7 = vor.u32 %v1739_v4, %v1498_v3  ;;  %v1478_v13 = vld [vmem:[#allocation2 + $0x74] sm:$0xf]  ;;  %v1735_v14 = vld [vmem:[#allocation2 + $0x8c] sm:$0xf0]  ;;  %v1734_v15 = vld [vmem:[#allocation2 + $0x78] sm:$0xf] }
  0x1e   :  { %410 = vmatpush.bf16.msra.mxu2 %v1519_v52  ;;  %v1479_v16 = vor.u32 %v1735_v14, %v1478_v13  ;;  %v1486_v18 = vld [vmem:[#allocation2 + $0x7c] sm:$0xf]  ;;  %v1736_v19 = vld [vmem:[#allocation2 + $0x94] sm:$0xf0]  ;;  %v1731_v24 = vld [vmem:[#allocation2 + $0x40] sm:$0xf] }
  0x1f   :  { %424 = vmatpush.bf16.msra.mxu3 %v1523_v53  ;;  %v1487_v21 = vor.u32 %v1736_v19, %v1486_v18  ;;  %v1466_v22 = vld [vmem:[#allocation2 + $0x3c] sm:$0xf]  ;;  %v1474_v27 = vld [vmem:[#allocation2 + $0x44] sm:$0xf]  ;;  %v1733_v28 = vld [vmem:[#allocation2 + $0x5c] sm:$0xf0] }
  0x20   :  { %248 = vmatpush.bf16.msra.mxu0 %v1433_v17  ;;  %v1480_v17 = vld [vmem:[#allocation2 + $0x90] sm:$0xf0]  ;;  %v1475_v30 = vor.u32 %v1733_v28, %v1474_v27  ;;  %v1454_v31 = vld [vmem:[#allocation2 + $0x4] sm:$0xf]  ;;  %v1729_v32 = vld [vmem:[#allocation2 + $0x1c] sm:$0xf0] }
  0x21   :  { %397 = vmatpush.bf16.msra.mxu1 %v1503_v60  ;;  %v1728_v33 = vld [vmem:[#allocation2 + $0x8] sm:$0xf]  ;;  %v1455_v34 = vor.u32 %v1729_v32, %v1454_v31  ;;  %v1456_v35 = vld [vmem:[#allocation2 + $0x20] sm:$0xf0]  ;;  %v1462_v36 = vld [vmem:[#allocation2 + $0xc] sm:$0xf] }
  0x22   :  { %411 = vmatpush.bf16.msra.mxu2 %v1507_v61  ;;  %v1730_v37 = vld [vmem:[#allocation2 + $0x24] sm:$0xf0]  ;;  %v1459_v38 = vor.u32 %v1728_v33, %v1456_v35  ;;  %vm478_vm4 = vcmask 523264   ;;  %vm495_vm5 = vcmask 64512   ;;  %s1404_s11 = sshll.u32 %s2175_s6, 4  ;;  %s1405_s11 = int_to_ptr.hbm [resolvable:$true] %s1404_s11 }
  0x23   :  { %425 = vmatpush.bf16.msra.mxu3 %v1511_v62  ;;  %v1463_v39 = vor.u32 %v1730_v37, %v1462_v36  ;;  %v169_v46 = vld [vmem:[%s2174_s5] ss:$4 sm:$0x7] }
  0x24   :  { %249 = vmatpush.bf16.msra.mxu0 %v1429_v20  ;;  %v1483_v20 = vor.u32 %v1734_v15, %v1480_v17  ;;  %v260_v47 = vperm.slane %v169_v46, 0  ;;  %v261_v51 = vperm.slane %v169_v46, 1  ;;  %v262_v52 = vperm.slane %v169_v46, 2 }
  0x25   :  { %398 = vmatpush.bf16.msra.mxu1 %v1491_v5 }
  0x26   :  { %412 = vmatpush.bf16.msra.mxu2 %v1495_v6 }
  0x27   :  { %426 = vmatpush.bf16.msra.mxu3 %v1499_v7 }
  0x28   :  { %250 = vmatpush.bf16.msra.mxu0 %v1425_v23  ;;  %v1732_v23 = vld [vmem:[#allocation2 + $0x54] sm:$0xf0] }
  0x29   :  { %399 = vmatpush.bf16.msra.mxu1 %v1479_v16  ;;  %v1467_v25 = vor.u32 %v1732_v23, %v1466_v22 }
  0x2a   :  { %413 = vmatpush.bf16.msra.mxu2 %v1483_v20 }
  0x2b   :  { %427 = vmatpush.bf16.msra.mxu3 %v1487_v21 }
  0x2c   :  { %251 = vmatpush.bf16.msra.mxu0 %v1421_v26  ;;  %v1468_v26 = vld [vmem:[#allocation2 + $0x58] sm:$0xf0] }
  0x2d   :  { %v1471_v29 = vor.u32 %v1731_v24, %v1468_v26  ;;  %400 = vmatpush.bf16.msra.mxu1 %v1467_v25 }
  0x2f   :  { %414 = vmatpush.bf16.msra.mxu2 %v1471_v29  ;;  %428 = vmatpush.bf16.msra.mxu3 %v1475_v30 }
  0x31   :  { %401 = vmatpush.bf16.msra.mxu1 %v1455_v34 }
  0x33   :  { %415 = vmatpush.bf16.msra.mxu2 %v1459_v38  ;;  %429 = vmatpush.bf16.msra.mxu3 %v1463_v39 }
  0x80   :  { %v184_v8 = vpop.permute.xlu0 %183 }
  0x81   :  { %vm188_vm0 = vcmp.eq.s32.totalorder %v181_v10, %v184_v8 }
  0x88   :  { %v187_v11 = vpop.permute.xlu0 %186 }
  0x89   :  { %vm189_vm1 = vcmp.eq.s32.totalorder %v181_v10, %v187_v11 }
  0x8a   :  { %vm1450_vm2 = vmpackc.low %vm189_vm1, %vm188_vm0 }
  0x8b   :  { %1451 = vmatmul.msk.bf16.vlgmr.msra.gmra.mxu0 %vm1450_vm2, %v1985_v12 }
 0x108   :  { %v253_v40 = vpop.f32.mrf.mxu0 }
 0x109   :  { %v2040_v43 = vadd.f32 %v253_v40, %v195_v41 }
 0x110   :  { %v255_v42 = vpop.f32.mrf.mxu0 }
 0x111   :  { %v2042_v44 = vadd.f32 %v255_v42, %v195_v41 }
 0x113   :  { %v258_v45 = vpack.c.bf16 %v2042_v44, %v2040_v43 }
 0x115   :  { %402 = vmatmul.bf16.vlgmr.msra.gmra.mxu1 %v258_v45  ;;  %416 = vmatmul.bf16.vlgmr.msra.gmra.mxu2 %v258_v45 }
 0x116   :  { %430 = vmatmul.bf16.vlgmr.msra.gmra.mxu3 %v258_v45 }
 0x192   :  { %v403_v48 = vpop.f32.mrf.mxu1 }
 0x193   :  { %v404_v49 = vadd.f32 %v403_v48, %v260_v47 }
 0x195   :  { %v439_v50 = vpack.c.bf16 %v404_v49, %v404_v49 }
 0x197   :  { %582 = vrot.lane.b32.xlu2 %v439_v50, %s1982_s9 }
 0x198   :  { %v417_v53 = vpop.f32.mrf.mxu2 }
 0x199   :  { %v418_v54 = vadd.f32 %v417_v53, %v261_v51  ;;  %v431_v55 = vpop.f32.mrf.mxu3 }
 0x19a   :  { %v432_v56 = vadd.f32 %v431_v55, %v262_v52  ;;  %v405_v57 = vpop.f32.mrf.mxu1 }
 0x19b   :  { %v406_v58 = vadd.f32 %v405_v57, %v260_v47  ;;  %440 = vxpose.xlu0.b32.start.end [1/1] (short) (narrow) %v418_v54, 64 }
 0x19c   :  { %v2050_v59 = vpack.c.bf16 %v432_v56, %v432_v56 }
 0x19d   :  { %v655_v60 = vpack.c.bf16 %v406_v58, %v406_v58 }
 0x19e   :  { %v526_v61 = vsel %vm524_vm3, %v2050_v59, 0 }
 0x19f   :  { %535 = vmatpush.bf16.msrb.mxu1 %v526_v61  ;;  %795 = vrot.lane.b32.xlu2 %v655_v60, %s1982_s9 }
 0x1a0   :  { %v419_v62 = vpop.f32.mrf.mxu2 }
 0x1a1   :  { %v420_v63 = vadd.f32 %v419_v62, %v261_v51  ;;  %v433_v0 = vpop.f32.mrf.mxu3 }
 0x1a2   :  { %v434_v1 = vadd.f32 %v433_v0, %v262_v52 }
 0x1a3   :  { %v1804_v2 = vpack.i.bf16 %v420_v63, %v418_v54 }
 0x1a4   :  { %v2055_v3 = vpack.c.bf16 %v434_v1, %v434_v1 }
 0x1a5   :  { %1805 = vrot.lane.b32.xlu1 %v1804_v2, %s1982_s9 }
 0x1a6   :  { %v739_v4 = vsel %vm524_vm3, %v2055_v3, 0 }
 0x1a7   :  { %748 = vmatpush.bf16.msra.mxu1 %v739_v4 }
 0x1c5   :  { %656 = vxpose.xlu2.b32.start.end [1/1] (short) (narrow) %v420_v63, 64 }
 0x1f1   :  { %v2060_v8 = vpop.permute.xlu2 %582 }
 0x1f9   :  { %v2062_v10 = vpop.permute.xlu2 %795 }
 0x217   :  { %v1806_v5 = vpop.permute.xlu1 %1805 }
 0x218   :  { %1810 = vxpose.xlu1.b32.start.end [1/1] (short) (narrow) %v1806_v5, 64 }
 0x23f   :  { %v456_v6 = vpop.trf.xlu0 }
 0x247   :  { %v457_v7 = vpop.trf.xlu0 }
 0x248   :  { %v472_v24 = vpack.c.bf16 %v457_v7, %v456_v6 }
 0x24f   :  { %v458_v9 = vpop.trf.xlu0 }
 0x257   :  { %v459_v11 = vpop.trf.xlu0 }
 0x258   :  { %v473_v22 = vpack.c.bf16 %v459_v11, %v458_v9 }
 0x25e   :  { %v672_v12 = vpop.trf.xlu2 }
 0x25f   :  { %v460_v13 = vpop.trf.xlu0 }
 0x266   :  { %v673_v14 = vpop.trf.xlu2 }
 0x267   :  { %v461_v15 = vpop.trf.xlu0  ;;  %v688_v31 = vpack.c.bf16 %v673_v14, %v672_v12 }
 0x268   :  { %v474_v21 = vpack.c.bf16 %v461_v15, %v460_v13 }
 0x26e   :  { %v674_v16 = vpop.trf.xlu2 }
 0x26f   :  { %v462_v17 = vpop.trf.xlu0 }
 0x276   :  { %v675_v18 = vpop.trf.xlu2 }
 0x277   :  { %v463_v19 = vpop.trf.xlu0  ;;  %v689_v30 = vpack.c.bf16 %v675_v18, %v674_v16 }
 0x278   :  { %v475_v20 = vpack.c.bf16 %v463_v19, %v462_v17 }
 0x27a   :  { %486 = vmatpush.bf16.msrb.mxu3 %v475_v20 }
 0x27e   :  { %487 = vmatpush.bf16.msrb.mxu3 %v474_v21  ;;  %v676_v23 = vpop.trf.xlu2 }
 0x282   :  { %488 = vmatpush.bf16.msrb.mxu3 %v473_v22 }
 0x286   :  { %489 = vmatpush.bf16.msrb.mxu3 %v472_v24  ;;  %v677_v25 = vpop.trf.xlu2 }
 0x287   :  { %v690_v29 = vpack.c.bf16 %v677_v25, %v676_v23 }
 0x289   :  { %1549 = vmatmul.msk.bf16.vlgmr.msrb.gmra.mxu3 %vm478_vm4, %v439_v50  ;;  %v2069_v50 = vld [vmem:[%s2170_s1] sm:$0x1] }
 0x28a   :  { %v1548_v54 = vadd.f32 -1.0, %v2069_v50 }
 0x28e   :  { %v678_v26 = vpop.trf.xlu2 }
 0x296   :  { %v679_v27 = vpop.trf.xlu2 }
 0x297   :  { %v691_v28 = vpack.c.bf16 %v679_v27, %v678_v26 }
 0x299   :  { %701 = vmatpush.bf16.msrb.mxu0 %v691_v28 }
 0x29d   :  { %702 = vmatpush.bf16.msrb.mxu0 %v690_v29 }
 0x2a1   :  { %703 = vmatpush.bf16.msrb.mxu0 %v689_v30 }
 0x2a5   :  { %704 = vmatpush.bf16.msrb.mxu0 %v688_v31 }
 0x2a8   :  { %1554 = vmatmul.msk.bf16.vlgmr.msrb.gmra.mxu0 %vm478_vm4, %v655_v60  ;;  %v438_v60 = vmul.f32 1e+09, %v1548_v54 }
 0x2aa   :  { %v477_v1 = vperm.slane %v438_v60, 0 }
 0x2bc   :  { %v1811_v32 = vpop.trf.xlu1 }
 0x2bd   :  { %v1815_v34 = vunpack.i.h.bf16 %v1811_v32  ;;  %v1812_v58 = vunpack.i.l.bf16 %v1811_v32 }
 0x2c4   :  { %v1816_v33 = vpop.trf.xlu1 }
 0x2c5   :  { %v1820_v35 = vunpack.i.h.bf16 %v1816_v33  ;;  %v1817_v56 = vunpack.i.l.bf16 %v1816_v33 }
 0x2c7   :  { %v790_v36 = vpack.c.bf16 %v1820_v35, %v1815_v34  ;;  %v577_v62 = vpack.c.bf16 %v1817_v56, %v1812_v58 }
 0x2cc   :  { %v1821_v37 = vpop.trf.xlu1 }
 0x2cd   :  { %v1822_v53 = vunpack.i.l.bf16 %v1821_v37  ;;  %v1825_v9 = vunpack.i.h.bf16 %v1821_v37 }
 0x2d4   :  { %v1826_v38 = vpop.trf.xlu1 }
 0x2d5   :  { %v1827_v52 = vunpack.i.l.bf16 %v1826_v38  ;;  %v1830_v4 = vunpack.i.h.bf16 %v1826_v38 }
 0x2d7   :  { %v578_v55 = vpack.c.bf16 %v1827_v52, %v1822_v53  ;;  %v791_v12 = vpack.c.bf16 %v1830_v4, %v1825_v9 }
 0x2dc   :  { %v1831_v39 = vpop.trf.xlu1 }
 0x2dd   :  { %v1832_v49 = vunpack.i.l.bf16 %v1831_v39  ;;  %v1835_v2 = vunpack.i.h.bf16 %v1831_v39 }
 0x2e4   :  { %v1836_v40 = vpop.trf.xlu1 }
 0x2e5   :  { %v1837_v48 = vunpack.i.l.bf16 %v1836_v40  ;;  %v1840_v63 = vunpack.i.h.bf16 %v1836_v40 }
 0x2e7   :  { %v579_v51 = vpack.c.bf16 %v1837_v48, %v1832_v49  ;;  %v792_v6 = vpack.c.bf16 %v1840_v63, %v1835_v2 }
 0x2ec   :  { %v1841_v41 = vpop.trf.xlu1 }
 0x2ed   :  { %v1842_v46 = vunpack.i.l.bf16 %v1841_v41  ;;  %v1845_v61 = vunpack.i.h.bf16 %v1841_v41 }
 0x2f4   :  { %v1846_v42 = vpop.trf.xlu1 }
 0x2f5   :  { %v1847_v45 = vunpack.i.l.bf16 %v1846_v42  ;;  %v1850_v57 = vunpack.i.h.bf16 %v1846_v42 }
 0x2f7   :  { %v580_v47 = vpack.c.bf16 %v1847_v45, %v1842_v46  ;;  %v793_v0 = vpack.c.bf16 %v1850_v57, %v1845_v61 }
 0x2f9   :  { %591 = vmatpush.bf16.msrb.mxu2 %v580_v47 }
 0x2fd   :  { %592 = vmatpush.bf16.msrb.mxu2 %v579_v51 }
 0x301   :  { %593 = vmatpush.bf16.msrb.mxu2 %v578_v55 }
 0x305   :  { %594 = vmatpush.bf16.msrb.mxu2 %v577_v62 }
 0x308   :  { %1551 = vmatmul.msk.bf16.vlgmr.msrb.gmra.mxu2 %vm478_vm4, %v2060_v8  ;;  %v652_v8 = vld [vmem:[%s2170_s1 + $0x1] sm:$0x1] }
 0x309   :  { %804 = vmatpush.bf16.msra.mxu2 %v793_v0  ;;  %v1553_v16 = vadd.f32 -1.0, %v652_v8 }
 0x30b   :  { %v654_v17 = vmul.f32 1e+09, %v1553_v16 }
 0x30c   :  { %v491_v5 = vpop.f32.mrf.mxu3 }
 0x30d   :  { %v492_v7 = vadd.f32 %v491_v5, %v477_v1  ;;  %805 = vmatpush.bf16.msra.mxu2 %v792_v6  ;;  %v693_v20 = vperm.slane %v654_v17, 0 }
 0x30f   :  { %v496_v11 = vsel %vm495_vm5, %v492_v7, -inf }
 0x310   :  { %497 = vmax.xlane.f32.xlu1 %v496_v11 }
 0x311   :  { %806 = vmatpush.bf16.msra.mxu2 %v791_v12 }
 0x314   :  { %v493_v13 = vpop.f32.mrf.mxu3 }
 0x315   :  { %807 = vmatpush.bf16.msra.mxu2 %v790_v36 }
 0x318   :  { %1556 = vmatmul.msk.bf16.vlgmr.msra.gmra.mxu2 %vm478_vm4, %v2062_v10 }
 0x325   :  { %v706_v14 = vpop.f32.mrf.mxu0 }
 0x326   :  { %v707_v22 = vadd.f32 %v706_v14, %v693_v20 }
 0x328   :  { %v710_v24 = vsel %vm495_vm5, %v707_v22, -inf }
 0x32d   :  { %v708_v15 = vpop.f32.mrf.mxu0 }
 0x383   :  { %v498_v33 = vpop.xlane.xlu1 %497 }
 0x384   :  { %v499_v36 = vsub.f32 %v492_v7, %v498_v33 }
 0x386   :  { %v500_v39 = vmul.f32 1.442695, %v499_v36 }
 0x38b   :  { %v596_v18 = vpop.f32.mrf.mxu2 }
 0x38c   :  { %v597_v19 = vadd.f32 %v596_v18, %v477_v1 }
 0x38e   :  { %v600_v21 = vsel %vm495_vm5, %v597_v19, -inf }
 0x38f   :  { %601 = vmax.xlane.f32.xlu0 %v600_v21 }
 0x393   :  { %v598_v23 = vpop.f32.mrf.mxu2 }
 0x397   :  { %711 = vmax.xlane.f32.xlu0 %v710_v24 }
 0x39b   :  { %v809_v10 = vpop.f32.mrf.mxu2 }
 0x39c   :  { %v810_v25 = vadd.f32 %v809_v10, %v693_v20 }
 0x39e   :  { %v813_v26 = vsel %vm495_vm5, %v810_v25, -inf }
 0x39f   :  { %814 = vmax.xlane.f32.xlu2 %v813_v26 }
 0x3a3   :  { %v811_v27 = vpop.f32.mrf.mxu2 }
 0x3ab   :  { %839 = vrot.lane.b32.xlu0 %v2055_v3, %s1982_s9 }
 0x3b7   :  { %626 = vrot.lane.b32.xlu2 %v2050_v59, %s1982_s9 }
 0x402   :  { %v602_v28 = vpop.xlane.xlu0 %601 }
 0x403   :  { %v603_v29 = vsub.f32 %v597_v19, %v602_v28 }
 0x405   :  { %v604_v30 = vmul.f32 1.442695, %v603_v29 }
 0x407   :  { %1862 = vpow2.f32 %v604_v30 }
 0x40a   :  { %v712_v37 = vpop.xlane.xlu0 %711 }
 0x40b   :  { %v713_v41 = vsub.f32 %v707_v22, %v712_v37 }
 0x40d   :  { %v1863_v31 = vpop.eup %1862  ;;  %v714_v47 = vmul.f32 1.442695, %v713_v41 }
 0x40e   :  { %v606_v32 = vsel %vm495_vm5, %v1863_v31, 0.0 }
 0x40f   :  { %607 = vadd.xlane.f32.xlu1 %v606_v32 }
 0x412   :  { %v815_v34 = vpop.xlane.xlu2 %814 }
 0x413   :  { %v816_v35 = vsub.f32 %v810_v25, %v815_v34 }
 0x415   :  { %v817_v38 = vmul.f32 1.442695, %v816_v35 }
 0x417   :  { %1864 = vpow2.f32 %v817_v38 }
 0x418   :  { %1866 = vpow2.f32 %v500_v39 }
 0x419   :  { %1868 = vpow2.f32 %v714_v47  ;;  %v1584_v47 = vld [vmem:[#allocation2 + $0x160] sm:$0xf] }
 0x41a   :  { %v627_v3 = vpop.permute.xlu2 %626 }
 0x41b   :  { %v632_v40 = vsel %vm524_vm3, %v627_v3, 0 }
 0x41c   :  { %641 = vmatpush.bf16.msra.mxu3 %v632_v40 }
 0x41d   :  { %v1865_v59 = vpop.eup %1864  ;;  %v840_v42 = vpop.permute.xlu0 %839 }
 0x41e   :  { %v845_v45 = vsel %vm524_vm3, %v840_v42, 0  ;;  %v819_v46 = vsel %vm495_vm5, %v1865_v59, 0.0  ;;  %v2091_v48 = vpop.eup %1866 }
 0x41f   :  { %820 = vadd.xlane.f32.xlu1 %v819_v46  ;;  %v502_v49 = vsel %vm495_vm5, %v2091_v48, 0.0  ;;  %v2095_v51 = vpop.eup %1868  ;;  %v1759_v46 = vld [vmem:[#allocation2 + $0x1b0] sm:$0xf0] }
 0x420   :  { %854 = vmatpush.bf16.msrb.mxu3 %v845_v45  ;;  %v716_v52 = vsel %vm495_vm5, %v2095_v51, 0.0  ;;  %v1588_v45 = vld [vmem:[#allocation2 + $0x198] sm:$0xf] }
 0x427   :  { %503 = vadd.xlane.f32.xlu1 %v502_v49  ;;  %v1758_v49 = vld [vmem:[#allocation2 + $0x178] sm:$0xf0] }
 0x42f   :  { %717 = vadd.xlane.f32.xlu1 %v716_v52  ;;  %v1585_v52 = vor.u32 %v1758_v49, %v1584_v47  ;;  %v1640_v47 = vld [vmem:[#allocation2 + $0x164] sm:$0xf]  ;;  %v1772_v49 = vld [vmem:[#allocation2 + $0x168] sm:$0xf] }
 0x482   :  { %v608_v53 = vpop.xlane.xlu1 %607 }
 0x483   :  { %1870 = vrcp.f32 %v608_v53  ;;  %v620_v57 = vand.u32 2147483648, %v608_v53  ;;  %v618_v60 = vand.u32 2147483647, %v608_v53  ;;  %vm614_vm7 = vweird.f32 %v608_v53 }
 0x485   :  { %v621_v62 = vor.u32 1.1754944e-38, %v620_v57  ;;  %vm619_vm9 = vcmp.eq.f32.partialorder %v618_v60, 8.507059e+37  ;;  %v1756_v60 = vld [vmem:[#allocation2 + $0x108] sm:$0xf0] }
 0x489   :  { %v1871_v54 = vpop.eup %1870 }
 0x48a   :  { %v610_v55 = vmul.f32 %v1871_v54, %v608_v53  ;;  %vm615_vm6 = vweird.f32 %v1871_v54  ;;  %v1580_v53 = vld [vmem:[#allocation2 + $0x128] sm:$0xf] }
 0x48b   :  { %vm616_vm8 = vmor %vm614_vm7, %vm615_vm6 }
 0x48c   :  { %v611_v56 = vsub.f32 1.0, %v610_v55 }
 0x48e   :  { %v612_v58 = vmul.f32 %v1871_v54, %v611_v56 }
 0x490   :  { %v613_v61 = vadd.f32 %v1871_v54, %v612_v58 }
 0x492   :  { %v617_v63 = vsel %vm616_vm8, %v1871_v54, %v613_v61  ;;  %v821_v0 = vpop.xlane.xlu1 %820  ;;  %v1757_v54 = vld [vmem:[#allocation2 + $0x140] sm:$0xf0] }
 0x493   :  { %v622_v1 = vsel %vm619_vm9, %v621_v62, %v617_v63  ;;  %1872 = vrcp.f32 %v821_v0  ;;  %v833_v11 = vand.u32 2147483648, %v821_v0  ;;  %v831_v13 = vand.u32 2147483647, %v821_v0  ;;  %v1572_v62 = vld [vmem:[#allocation2 + $0xb8] sm:$0xf] }
 0x494   :  { %v623_v2 = vmul.f32 %v1863_v31, %v622_v1  ;;  %vm827_vm11 = vweird.f32 %v821_v0  ;;  %v1581_v57 = vor.u32 %v1757_v54, %v1580_v53  ;;  %v1755_v63 = vld [vmem:[#allocation2 + $0xd0] sm:$0xf0]  ;;  %v1642_v53 = vld [vmem:[#allocation2 + $0x180] sm:$0xf0] }
 0x495   :  { %v834_v8 = vor.u32 1.1754944e-38, %v833_v11  ;;  %vm832_vm13 = vcmp.eq.f32.partialorder %v831_v13, 8.507059e+37  ;;  %v1573_v1 = vor.u32 %v1755_v63, %v1572_v62  ;;  %v1645_v54 = vor.u32 %v1772_v49, %v1642_v53  ;;  %v1769_v62 = vld [vmem:[#allocation2 + $0x10c] sm:$0xf0]  ;;  %v1768_v63 = vld [vmem:[#allocation2 + $0xf8] sm:$0xf] }
 0x496   :  { %v624_v4 = vpack.c.bf16 %v623_v2, %v623_v2 }
 0x498   :  { %1552 = vmatmul.msk.bf16.vlgmr.msra.gmra.mxu3 %vm495_vm5, %v624_v4  ;;  %v1568_v4 = vld [vmem:[#allocation2 + $0x80] sm:$0xf] }
 0x499   :  { %v1873_v5 = vpop.eup %1872 }
 0x49a   :  { %v823_v6 = vmul.f32 %v1873_v5, %v821_v0  ;;  %v504_v7 = vpop.xlane.xlu1 %503  ;;  %vm828_vm10 = vweird.f32 %v1873_v5 }
 0x49b   :  { %1874 = vrcp.f32 %v504_v7  ;;  %vm829_vm12 = vmor %vm827_vm11, %vm828_vm10  ;;  %v516_v22 = vand.u32 2147483648, %v504_v7  ;;  %v514_v24 = vand.u32 2147483647, %v504_v7  ;;  %vm510_vm15 = vweird.f32 %v504_v7 }
 0x49c   :  { %v824_v9 = vsub.f32 1.0, %v823_v6 }
 0x49d   :  { %v517_v27 = vor.u32 1.1754944e-38, %v516_v22  ;;  %vm515_vm1 = vcmp.eq.f32.partialorder %v514_v24, 8.507059e+37  ;;  %v1856_v22 = vld [vmem:[%s2174_s5 + $0x9] ss:$0 sm:$0xff] }
 0x49e   :  { %v825_v12 = vmul.f32 %v1873_v5, %v824_v9  ;;  %v1753_v9 = vld [vmem:[#allocation2 + $0x60] sm:$0xf0] }
 0x4a0   :  { %v826_v14 = vadd.f32 %v1873_v5, %v825_v12 }
 0x4a1   :  { %v1875_v15 = vpop.eup %1874 }
 0x4a2   :  { %v830_v16 = vsel %vm829_vm12, %v1873_v5, %v826_v14  ;;  %v506_v17 = vmul.f32 %v1875_v15, %v504_v7  ;;  %v718_v18 = vpop.xlane.xlu1 %717  ;;  %vm511_vm14 = vweird.f32 %v1875_v15  ;;  %v1754_v5 = vld [vmem:[#allocation2 + $0x98] sm:$0xf0]  ;;  %v1564_v7 = vld [vmem:[#allocation2 + $0x48] sm:$0xf]  ;;  %v1560_v14 = vld [vmem:[#allocation2 + $0x10] sm:$0xf] }
 0x4a3   :  { %v835_v19 = vsel %vm832_vm13, %v834_v8, %v830_v16  ;;  %1876 = vrcp.f32 %v718_v18  ;;  %vm512_vm0 = vmor %vm510_vm15, %vm511_vm14  ;;  %v730_v36 = vand.u32 2147483648, %v718_v18  ;;  %vm724_vm3 = vweird.f32 %v718_v18 }
 0x4a4   :  { %v836_v20 = vmul.f32 %v1865_v59, %v835_v19  ;;  %v507_v21 = vsub.f32 1.0, %v506_v17  ;;  %v728_v37 = vand.u32 2147483647, %v718_v18  ;;  %v1569_v6 = vor.u32 %v1754_v5, %v1568_v4  ;;  %v1616_v4 = vld [vmem:[#allocation2 + $0xbc] sm:$0xf] }
 0x4a5   :  { %v731_v39 = vor.u32 1.1754944e-38, %v730_v36  ;;  %v1565_v11 = vor.u32 %v1753_v9, %v1564_v7  ;;  %v1767_v5 = vld [vmem:[#allocation2 + $0xd4] sm:$0xf0]  ;;  %v1618_v9 = vld [vmem:[#allocation2 + $0xd8] sm:$0xf0]  ;;  %vm1309_vm14 = vcmask 57344  }
 0x4a6   :  { %v508_v23 = vmul.f32 %v1875_v15, %v507_v21  ;;  %v837_v10 = vpack.c.bf16 %v836_v20, %v836_v20  ;;  %vm729_vm7 = vcmp.eq.f32.partialorder %v728_v37, 8.507059e+37  ;;  %v1617_v7 = vor.u32 %v1767_v5, %v1616_v4  ;;  %v1778_v4 = vld [vmem:[#allocation5 + $0x10] sm:$0xff]  ;;  %v1415_v5 = vld [vmem:[%s2174_s5 + $0x1] ss:$4 sm:$0x3] }
 0x4a8   :  { %v509_v25 = vadd.f32 %v1875_v15, %v508_v23  ;;  %1557 = vmatmul.msk.bf16.vlgmr.msrb.gmra.mxu3 %vm495_vm5, %v837_v10 }
 0x4a9   :  { %v1877_v26 = vpop.eup %1876 }
 0x4aa   :  { %v720_v28 = vmul.f32 %v1877_v26, %v718_v18  ;;  %v513_v29 = vsel %vm512_vm0, %v1875_v15, %v509_v25  ;;  %vm725_vm2 = vweird.f32 %v1877_v26  ;;  %v1752_v15 = vld [vmem:[#allocation2 + $0x28] sm:$0xf0] }
 0x4ab   :  { %v518_v30 = vsel %vm515_vm1, %v517_v27, %v513_v29  ;;  %vm726_vm6 = vmor %vm724_vm3, %vm725_vm2  ;;  %v1561_v8 = vor.u32 %v1752_v15, %v1560_v14  ;;  %v1764_v14 = vld [vmem:[#allocation2 + $0x88] sm:$0xf] }
 0x4ac   :  { %v721_v31 = vsub.f32 1.0, %v720_v28  ;;  %v519_v32 = vmul.f32 %v2091_v48, %v518_v30  ;;  %v1589_v48 = vor.u32 %v1759_v46, %v1588_v45  ;;  %v1986_v28 = vmov 128.0   ;;  %v1650_v45 = vld [vmem:[#allocation2 + $0x1b8] sm:$0xf0] }
 0x4ad   :  { %1878 = vrcp.f32 %v1986_v28 }
 0x4ae   :  { %v722_v33 = vmul.f32 %v1877_v26, %v721_v31  ;;  %v520_v34 = vpack.c.bf16 %v519_v32, %v519_v32  ;;  %915 = vmatpush.bf16.msra.mxu0 %v1589_v48  ;;  %v1773_v48 = vld [vmem:[#allocation2 + $0x17c] sm:$0xf0] }
 0x4b0   :  { %v723_v35 = vadd.f32 %v1877_v26, %v722_v33  ;;  %1550 = vmatmul.msk.bf16.vlgmr.msrb.gmra.mxu1 %vm495_vm5, %v520_v34 }
 0x4b2   :  { %v727_v38 = vsel %vm726_vm6, %v1877_v26, %v723_v35  ;;  %916 = vmatpush.bf16.msra.mxu0 %v1585_v52  ;;  %v1641_v52 = vor.u32 %v1773_v48, %v1640_v47  ;;  %v1857_v48 = vld [vmem:[%s2174_s5 + $0x6] ss:$0 sm:$0xff] }
 0x4b3   :  { %v732_v3 = vsel %vm729_vm7, %v731_v39, %v727_v38  ;;  %v1879_v29 = vpop.eup %1878 }
 0x4b4   :  { %v733_v40 = vmul.f32 %v2095_v51, %v732_v3  ;;  %v1576_v51 = vld [vmem:[#allocation2 + $0xf0] sm:$0xf]  ;;  %v936_v30 = vmul.f32 128.0, %v1879_v29 }
 0x4b5   :  { %v1577_v61 = vor.u32 %v1756_v60, %v1576_v51  ;;  %v1634_v51 = vld [vmem:[#allocation2 + $0x148] sm:$0xf0] }
 0x4b6   :  { %v734_v59 = vpack.c.bf16 %v733_v40, %v733_v40  ;;  %917 = vmatpush.bf16.msra.mxu0 %v1581_v57  ;;  %v937_v31 = vsub.f32 1.0, %v936_v30  ;;  %v1648_v40 = vld [vmem:[#allocation2 + $0x19c] sm:$0xf]  ;;  %v1770_v57 = vld [vmem:[#allocation2 + $0x130] sm:$0xf] }
 0x4b7   :  { %v1637_v60 = vor.u32 %v1770_v57, %v1634_v51  ;;  %v1783_v51 = vld [vmem:[#allocation5 + $0x38] sm:$0xff] }
 0x4b8   :  { %v938_v32 = vmul.f32 %v1879_v29, %v937_v31  ;;  %1233 = vmatpush.bf16.msra.mxu3 %v1783_v51 }
 0x4ba   :  { %918 = vmatpush.bf16.msra.mxu0 %v1577_v61  ;;  %v939_v33 = vadd.f32 %v1879_v29, %v938_v32  ;;  %v1624_v61 = vld [vmem:[#allocation2 + $0xf4] sm:$0xf] }
 0x4be   :  { %919 = vmatpush.bf16.msra.mxu0 %v1573_v1  ;;  %v1626_v1 = vld [vmem:[#allocation2 + $0x110] sm:$0xf0] }
 0x4c0   :  { %1555 = vmatmul.msk.bf16.vlgmr.msra.gmra.mxu1 %vm495_vm5, %v734_v59  ;;  %v1775_v59 = vld [vmem:[#allocation2 + $0x1b4] sm:$0xf0] }
 0x4c2   :  { %920 = vmatpush.bf16.msra.mxu0 %v1569_v6  ;;  %v1766_v6 = vld [vmem:[#allocation2 + $0xc0] sm:$0xf] }
 0x4c6   :  { %921 = vmatpush.bf16.msra.mxu0 %v1565_v11  ;;  %v1621_v11 = vor.u32 %v1766_v6, %v1618_v9  ;;  %v1787_v6 = vld [vmem:[#allocation5 + $0x58] sm:$0xff]  ;;  %v986_v9 = vperm.slane %v1415_v5, 0 }
 0x4ca   :  { %922 = vmatpush.bf16.msra.mxu0 %v1561_v8  ;;  %v1610_v8 = vld [vmem:[#allocation2 + $0xa0] sm:$0xf0] }
 0x51b   :  { %v643_v41 = vpop.f32.mrf.mxu3 }
 0x523   :  { %v645_v42 = vpop.f32.mrf.mxu3 }
 0x524   :  { %v1649_v42 = vor.u32 %v1775_v59, %v1648_v40 }
 0x526   :  { %1070 = vmatpush.bf16.msrb.mxu1 %v1649_v42 }
 0x52a   :  { %1071 = vmatpush.bf16.msrb.mxu1 %v1641_v52 }
 0x52b   :  { %v856_v55 = vpop.f32.mrf.mxu3 }
 0x52c   :  { %v1851_v56 = vpack.i.bf16 %v856_v55, %v643_v41  ;;  %v1774_v41 = vld [vmem:[#allocation2 + $0x1a0] sm:$0xf]  ;;  %v1632_v55 = vld [vmem:[#allocation2 + $0x12c] sm:$0xf] }
 0x52d   :  { %v537_v58 = vpop.f32.mrf.mxu1  ;;  %v1653_v46 = vor.u32 %v1774_v41, %v1650_v45 }
 0x52e   :  { %1852 = vrot.lane.b32.xlu1 %v1851_v56, %s1982_s9  ;;  %v1771_v56 = vld [vmem:[#allocation2 + $0x144] sm:$0xf0] }
 0x52f   :  { %1084 = vmatpush.bf16.msrb.mxu2 %v1653_v46 }
 0x533   :  { %v858_v0 = vpop.f32.mrf.mxu3  ;;  %1085 = vmatpush.bf16.msrb.mxu2 %v1645_v54 }
 0x534   :  { %v1625_v0 = vor.u32 %v1769_v62, %v1624_v61  ;;  %v1781_v61 = vld [vmem:[#allocation5 + $0x28] sm:$0xff]  ;;  %v1790_v62 = vld [vmem:[#allocation5 + $0x70] sm:$0xff] }
 0x535   :  { %v539_v2 = vpop.f32.mrf.mxu1 }
 0x536   :  { %v1629_v2 = vor.u32 %v1768_v63, %v1626_v1  ;;  %v1780_v63 = vld [vmem:[#allocation5 + $0x20] sm:$0xff]  ;;  %v1779_v1 = vld [vmem:[#allocation5 + $0x18] sm:$0xff] }
 0x537   :  { %1086 = vmatpush.bf16.msrb.mxu2 %v1637_v60  ;;  %v1782_v60 = vld [vmem:[#allocation5 + $0x30] sm:$0xff] }
 0x538   :  { %1234 = vmatpush.bf16.msra.mxu3 %v1782_v60 }
 0x53b   :  { %1087 = vmatpush.bf16.msrb.mxu2 %v1629_v2  ;;  %v1788_v2 = vld [vmem:[#allocation5 + $0x60] sm:$0xff] }
 0x53c   :  { %1235 = vmatpush.bf16.msra.mxu3 %v1781_v61 }
 0x53d   :  { %v750_v12 = vpop.f32.mrf.mxu1 }
 0x53f   :  { %1088 = vmatpush.bf16.msrb.mxu2 %v1621_v11  ;;  %v1786_v11 = vld [vmem:[#allocation5 + $0x50] sm:$0xff] }
 0x540   :  { %1236 = vmatpush.bf16.msra.mxu3 %v1780_v63  ;;  %v1859_v63 = vld [vmem:[%s2174_s5 + $0x2] ss:$0 sm:$0xff] }
 0x544   :  { %1237 = vmatpush.bf16.msra.mxu3 %v1779_v1 }
 0x545   :  { %v752_v13 = vpop.f32.mrf.mxu1 }
 0x546   :  { %v1765_v13 = vld [vmem:[#allocation2 + $0x9c] sm:$0xf0] }
 0x548   :  { %1238 = vmatpush.bf16.msra.mxu3 %v1778_v4 }
 0x5a0   :  { %v1853_v16 = vpop.permute.xlu1 %1852 }
 0x5a1   :  { %v1855_v17 = vunpack.i.h.bf16 %v1853_v16  ;;  %v1854_v18 = vunpack.i.l.bf16 %v1853_v16  ;;  %v1613_v16 = vor.u32 %v1764_v14, %v1610_v8 }
 0x5a3   :  { %v864_v19 = vsel %vm478_vm4, %v750_v12, %v1855_v17  ;;  %v651_v20 = vsel %vm478_vm4, %v537_v58, %v1854_v18  ;;  %vm940_vm4 = vweird.f32 %v1879_v29  ;;  %v1633_v58 = vor.u32 %v1771_v56, %v1632_v55  ;;  %v1608_v12 = vld [vmem:[#allocation2 + $0x84] sm:$0xf]  ;;  %1089 = vmatpush.bf16.msrb.mxu2 %v1613_v16  ;;  %v1600_v17 = vld [vmem:[#allocation2 + $0x4c] sm:$0xf]  ;;  %v1763_v18 = vld [vmem:[#allocation2 + $0x64] sm:$0xf0] }
 0x5a4   :  { %v865_v21 = vpack.c.bf16 %v864_v19, %v651_v20  ;;  %v2113_v34 = vsel %vm940_vm4, %v1879_v29, %v939_v33  ;;  %v1609_v15 = vor.u32 %v1765_v13, %v1608_v12  ;;  %v1762_v19 = vld [vmem:[#allocation2 + $0x50] sm:$0xf]  ;;  %v1601_v20 = vor.u32 %v1763_v18, %v1600_v17  ;;  %v1858_v55 = vld [vmem:[%s2174_s5 + $0xa] ss:$0 sm:$0xff]  ;;  %v1776_v13 = vld [vmem:[#allocation5] sm:$0xff] }
 0x5a5   :  { %1072 = vmatpush.bf16.msrb.mxu1 %v1633_v58  ;;  %v987_v16 = vperm.slane %v1415_v5, 1 }
 0x5a6   :  { %923 = vmatmul.bf16.vlgmr.msra.gmra.mxu0 %v865_v21  ;;  %v1602_v21 = vld [vmem:[#allocation2 + $0x68] sm:$0xf0] }
 0x5a9   :  { %1073 = vmatpush.bf16.msrb.mxu1 %v1625_v0  ;;  %v1789_v0 = vld [vmem:[#allocation5 + $0x68] sm:$0xff] }
 0x5ad   :  { %1074 = vmatpush.bf16.msrb.mxu1 %v1617_v7  ;;  %v1777_v7 = vld [vmem:[#allocation5 + $0x8] sm:$0xff] }
 0x5ae   :  { %1239 = vmatpush.bf16.msra.mxu3 %v1777_v7 }
 0x5b1   :  { %1075 = vmatpush.bf16.msrb.mxu1 %v1609_v15  ;;  %v1785_v15 = vld [vmem:[#allocation5 + $0x48] sm:$0xff] }
 0x5b2   :  { %1240 = vmatpush.bf16.msra.mxu3 %v1776_v13 }
 0x5b5   :  { %1076 = vmatpush.bf16.msrb.mxu1 %v1601_v20 }
 0x623   :  { %v924_v23 = vpop.f32.mrf.mxu0 }
 0x624   :  { %v925_v24 = vadd.f32 %v1856_v22, %v924_v23  ;;  %v1761_v23 = vld [vmem:[#allocation2 + $0x2c] sm:$0xf0] }
 0x626   :  { %v929_v10 = vadd.f32 %v925_v24, %v2040_v43 }
 0x628   :  { %931 = vadd.xlane.f32.xlu0 %v929_v10 }
 0x62b   :  { %v926_v25 = vpop.f32.mrf.mxu0 }
 0x62c   :  { %v927_v26 = vadd.f32 %v1856_v22, %v926_v25  ;;  %v1592_v22 = vld [vmem:[#allocation2 + $0x14] sm:$0xf]  ;;  %v1760_v25 = vld [vmem:[#allocation2 + $0x18] sm:$0xf] }
 0x62d   :  { %v1593_v28 = vor.u32 %v1761_v23, %v1592_v22 }
 0x62e   :  { %v930_v27 = vadd.f32 %v927_v26, %v2042_v44  ;;  %v1594_v26 = vld [vmem:[#allocation2 + $0x30] sm:$0xf0] }
 0x62f   :  { %v1597_v29 = vor.u32 %v1760_v25, %v1594_v26  ;;  %1077 = vmatpush.bf16.msrb.mxu1 %v1593_v28 }
 0x630   :  { %933 = vadd.xlane.f32.xlu2 %v930_v27 }
 0x69b   :  { %v932_v35 = vpop.xlane.xlu0 %931 }
 0x69c   :  { %v942_v36 = vmul.f32 %v2113_v34, %v932_v35 }
 0x69e   :  { %v2116_v43 = vsub.f32 %v929_v10, %v942_v36  ;;  %v1605_v10 = vor.u32 %v1762_v19, %v1602_v21  ;;  %v1784_v19 = vld [vmem:[#allocation5 + $0x40] sm:$0xff] }
 0x6a0   :  { %v946_v37 = vmul.f32 %v2116_v43, %v2116_v43  ;;  %1090 = vmatpush.bf16.msrb.mxu2 %v1605_v10 }
 0x6a2   :  { %948 = vadd.xlane.f32.xlu1 %v946_v37 }
 0x6a3   :  { %v934_v44 = vpop.xlane.xlu2 %933 }
 0x6a4   :  { %v943_v38 = vmul.f32 %v2113_v34, %v934_v44  ;;  %1091 = vmatpush.bf16.msrb.mxu2 %v1597_v29 }
 0x6a6   :  { %v2121_v39 = vsub.f32 %v930_v27, %v943_v38 }
 0x6a8   :  { %v947_v3 = vmul.f32 %v2121_v39, %v2121_v39 }
 0x6aa   :  { %950 = vadd.xlane.f32.xlu2 %v947_v3 }
 0x715   :  { %v949_v24 = vpop.xlane.xlu1 %948 }
 0x716   :  { %v952_v27 = vmul.f32 %v949_v24, %v2113_v34 }
 0x718   :  { %v954_v30 = vadd.f32 1e-05, %v952_v27 }
 0x71a   :  { %1880 = vrsqrt.f32 %v954_v30  ;;  %vm962_vm9 = vweird.f32 %v954_v30 }
 0x71d   :  { %v951_v31 = vpop.xlane.xlu2 %950 }
 0x71e   :  { %v953_v32 = vmul.f32 %v951_v31, %v2113_v34 }
 0x720   :  { %v1881_v33 = vpop.eup %1880  ;;  %v955_v35 = vadd.f32 1e-05, %v953_v32 }
 0x721   :  { %v957_v36 = vmul.f32 %v1881_v33, %v954_v30  ;;  %vm963_vm8 = vweird.f32 %v1881_v33 }
 0x722   :  { %1882 = vrsqrt.f32 %v955_v35  ;;  %vm964_vm10 = vmor %vm962_vm9, %vm963_vm8  ;;  %vm972_vm12 = vweird.f32 %v955_v35 }
 0x723   :  { %v958_v37 = vmul.f32 %v1881_v33, %v957_v36 }
 0x725   :  { %v959_v44 = vmul.f32 0.5, %v958_v37 }
 0x727   :  { %v960_v38 = vsub.f32 1.5, %v959_v44 }
 0x728   :  { %v1883_v3 = vpop.eup %1882 }
 0x729   :  { %v961_v40 = vmul.f32 %v1881_v33, %v960_v38  ;;  %v967_v59 = vmul.f32 %v1883_v3, %v955_v35  ;;  %vm973_vm11 = vweird.f32 %v1883_v3 }
 0x72a   :  { %vm974_vm13 = vmor %vm972_vm12, %vm973_vm11 }
 0x72b   :  { %v968_v41 = vmul.f32 %v1883_v3, %v967_v59  ;;  %v965_v42 = vsel %vm964_vm10, %v1881_v33, %v961_v40 }
 0x72c   :  { %v976_v47 = vmul.f32 %v965_v42, %v2116_v43 }
 0x72d   :  { %v969_v45 = vmul.f32 0.5, %v968_v41 }
 0x72e   :  { %v979_v54 = vmul.f32 %v1857_v48, %v976_v47 }
 0x72f   :  { %v970_v46 = vsub.f32 1.5, %v969_v45 }
 0x730   :  { %v2135_v57 = vadd.f32 %v1858_v55, %v979_v54 }
 0x731   :  { %v971_v49 = vmul.f32 %v1883_v3, %v970_v46 }
 0x733   :  { %v975_v52 = vsel %vm974_vm13, %v1883_v3, %v971_v49 }
 0x734   :  { %v977_v53 = vmul.f32 %v975_v52, %v2121_v39  ;;  %v1791_v39 = vld [vmem:[#allocation5 + $0x78] sm:$0xff] }
 0x735   :  { %1247 = vmatpush.bf16.msrb.mxu0 %v1791_v39 }
 0x736   :  { %v980_v56 = vmul.f32 %v1857_v48, %v977_v53 }
 0x738   :  { %v2137_v58 = vadd.f32 %v1858_v55, %v980_v56 }
 0x739   :  { %1248 = vmatpush.bf16.msrb.mxu0 %v1790_v62 }
 0x73a   :  { %v984_v43 = vpack.c.bf16 %v2137_v58, %v2135_v57 }
 0x73c   :  { %1078 = vmatmul.bf16.vlgmr.msrb.gmra.mxu1 %v984_v43  ;;  %1092 = vmatmul.bf16.vlgmr.msrb.gmra.mxu2 %v984_v43 }
 0x73d   :  { %1249 = vmatpush.bf16.msrb.mxu0 %v1789_v0 }
 0x741   :  { %1250 = vmatpush.bf16.msrb.mxu0 %v1788_v2 }
 0x745   :  { %1251 = vmatpush.bf16.msrb.mxu0 %v1787_v6 }
 0x749   :  { %1252 = vmatpush.bf16.msrb.mxu0 %v1786_v11 }
 0x74d   :  { %1253 = vmatpush.bf16.msrb.mxu0 %v1785_v15 }
 0x751   :  { %1254 = vmatpush.bf16.msrb.mxu0 %v1784_v19 }
 0x7b9   :  { %v1079_v12 = vpop.f32.mrf.mxu1 }
 0x7ba   :  { %v1080_v14 = vadd.f32 %v1079_v12, %v986_v9 }
 0x7bc   :  { %v1098_v8 = vmul.f32 %v1080_v14, %v1080_v14 }
 0x7be   :  { %v1102_v17 = vmul.f32 %v1098_v8, %v1080_v14 }
 0x7bf   :  { %v1093_v18 = vpop.f32.mrf.mxu2 }
 0x7c0   :  { %v1106_v20 = vmul.f32 0.044715, %v1102_v17  ;;  %v1094_v21 = vadd.f32 %v1093_v18, %v987_v16 }
 0x7c1   :  { %v1081_v22 = vpop.f32.mrf.mxu1 }
 0x7c2   :  { %v1110_v23 = vadd.f32 %v1106_v20, %v1080_v14  ;;  %v1099_v24 = vmul.f32 %v1094_v21, %v1094_v21  ;;  %v1082_v10 = vadd.f32 %v1081_v22, %v986_v9 }
 0x7c4   :  { %v1114_v25 = vmul.f32 0.7978846, %v1110_v23  ;;  %v1103_v26 = vmul.f32 %v1099_v24, %v1094_v21  ;;  %v1100_v27 = vmul.f32 %v1082_v10, %v1082_v10 }
 0x7c6   :  { %v1107_v28 = vmul.f32 0.044715, %v1103_v26  ;;  %v1104_v29 = vmul.f32 %v1100_v27, %v1082_v10  ;;  %1884 = vtanh.f32 %v1114_v25 }
 0x7c7   :  { %v1095_v30 = vpop.f32.mrf.mxu2 }
 0x7c8   :  { %v1111_v31 = vadd.f32 %v1107_v28, %v1094_v21  ;;  %v1108_v32 = vmul.f32 0.044715, %v1104_v29  ;;  %v1096_v33 = vadd.f32 %v1095_v30, %v987_v16 }
 0x7ca   :  { %v1115_v35 = vmul.f32 0.7978846, %v1111_v31  ;;  %v1112_v36 = vadd.f32 %v1108_v32, %v1082_v10  ;;  %v1101_v37 = vmul.f32 %v1096_v33, %v1096_v33 }
 0x7cc   :  { %v1116_v44 = vmul.f32 0.7978846, %v1112_v36  ;;  %v1105_v38 = vmul.f32 %v1101_v37, %v1096_v33  ;;  %1886 = vtanh.f32 %v1115_v35  ;;  %v1885_v3 = vpop.eup %1884  ;;  %v1860_v35 = vld [vmem:[%s2174_s5 + $0x3] ss:$0 sm:$0xff] }
 0x7cd   :  { %v1122_v41 = vadd.f32 1.0, %v1885_v3 }
 0x7ce   :  { %1888 = vtanh.f32 %v1116_v44  ;;  %v1109_v40 = vmul.f32 0.044715, %v1105_v38  ;;  %v1861_v44 = vld [vmem:[%s2174_s5 + $0x7] ss:$0 sm:$0xff]  ;;  %s1987_s5 = smov [#allocation7]  }
 0x7cf   :  { %v1126_v47 = vmul.f32 0.5, %v1122_v41  ;;  %s1402_s10 = sshll.u32 %s1987_s5, 4  ;;  %s1403_s10 = int_to_ptr.vmem [resolvable:$true] %s1402_s10 }
 0x7d0   :  { %v1113_v59 = vadd.f32 %v1109_v40, %v1096_v33 }
 0x7d1   :  { %v1130_v53 = vmul.f32 %v1126_v47, %v1080_v14 }
 0x7d2   :  { %v1117_v42 = vmul.f32 0.7978846, %v1113_v59  ;;  %v1887_v45 = vpop.eup %1886 }
 0x7d3   :  { %v1123_v49 = vadd.f32 1.0, %v1887_v45 }
 0x7d4   :  { %v1889_v46 = vpop.eup %1888  ;;  %1890 = vtanh.f32 %v1117_v42 }
 0x7d5   :  { %v1124_v48 = vadd.f32 1.0, %v1889_v46  ;;  %v1127_v56 = vmul.f32 0.5, %v1123_v49 }
 0x7d7   :  { %v1128_v52 = vmul.f32 0.5, %v1124_v48  ;;  %v1131_v39 = vmul.f32 %v1127_v56, %v1094_v21 }
 0x7d9   :  { %v1132_v54 = vmul.f32 %v1128_v52, %v1082_v10 }
 0x7da   :  { %v1891_v55 = vpop.eup %1890 }
 0x7db   :  { %v1125_v43 = vadd.f32 1.0, %v1891_v55  ;;  %v1134_v51 = vpack.c.bf16 %v1132_v54, %v1130_v53 }
 0x7dd   :  { %v1129_v60 = vmul.f32 0.5, %v1125_v43  ;;  %1241 = vmatmul.bf16.vlgmr.msra.gmra.mxu3 %v1134_v51 }
 0x7df   :  { %v1133_v61 = vmul.f32 %v1129_v60, %v1096_v33 }
 0x7e1   :  { %v1135_v62 = vpack.c.bf16 %v1133_v61, %v1131_v39 }
 0x7e3   :  { %1255 = vmatmul.bf16.vlgmr.msrb.gmra.mxu0 %v1135_v62 }
 0x860   :  { %v1242_v0 = vpop.f32.mrf.mxu3  ;;  %v1256_v1 = vpop.f32.mrf.mxu0 }
 0x861   :  { %v1243_v2 = vadd.f32 %v1859_v63, %v1242_v0 }
 0x863   :  { %v1257_v4 = vadd.f32 %v1256_v1, %v1243_v2 }
 0x865   :  { %v1261_v5 = vadd.f32 %v1257_v4, %v2135_v57  ;;  %v1353_v57 = vld [vmem:[%s2170_s1 + $0x1] sm:$0x1] }
 0x866   :  { %v1354_v20 = vsel %vm1309_vm14, %v1353_v57, 0.0 }
 0x867   :  { %1263 = vadd.xlane.f32.xlu2 %v1261_v5  ;;  %1355 = vadd.xlane.f32.xlu1 %v1354_v20 }
 0x868   :  { %v1244_v6 = vpop.f32.mrf.mxu3  ;;  %v1258_v9 = vpop.f32.mrf.mxu0 }
 0x869   :  { %v1245_v7 = vadd.f32 %v1859_v63, %v1244_v6 }
 0x86b   :  { %v1259_v11 = vadd.f32 %v1258_v9, %v1245_v7 }
 0x86d   :  { %v1262_v12 = vadd.f32 %v1259_v11, %v2137_v58  ;;  %v1310_v58 = vsel %vm1309_vm14, %v2069_v50, 0.0 }
 0x86f   :  { %1265 = vadd.xlane.f32.xlu0 %v1262_v12 }
 0x8da   :  { %v1264_v13 = vpop.xlane.xlu2 %1263  ;;  %v1356_v54 = vpop.xlane.xlu1 %1355 }
 0x8db   :  { %v1267_v14 = vmul.f32 %v1264_v13, %v2113_v34  ;;  %v1357_v55 = vmax.f32 %v1356_v54, 1.0 }
 0x8dd   :  { %v1269_v15 = vsub.f32 %v1261_v5, %v1267_v14  ;;  %vm1386_vm9 = vweird.f32 %v1357_v55  ;;  %v1392_v6 = vand.u32 2147483648, %v1357_v55  ;;  %v1390_v9 = vand.u32 2147483647, %v1357_v55 }
 0x8df   :  { %v1271_v8 = vmul.f32 %v1269_v15, %v1269_v15  ;;  %v1393_v11 = vor.u32 1.1754944e-38, %v1392_v6  ;;  %vm1391_vm12 = vcmp.eq.f32.partialorder %v1390_v9, 8.507059e+37 }
 0x8e1   :  { %1273 = vadd.xlane.f32.xlu2 %v1271_v8 }
 0x8e2   :  { %v1266_v16 = vpop.xlane.xlu0 %1265 }
 0x8e3   :  { %v1268_v17 = vmul.f32 %v1266_v16, %v2113_v34 }
 0x8e5   :  { %v1270_v18 = vsub.f32 %v1262_v12, %v1268_v17 }
 0x8e7   :  { %v1272_v19 = vmul.f32 %v1270_v18, %v1270_v18 }
 0x8e9   :  { %1275 = vadd.xlane.f32.xlu0 %v1272_v19 }
 0x8f1   :  { %1311 = vadd.xlane.f32.xlu0 %v1310_v58 }
 0x954   :  { %v1274_v21 = vpop.xlane.xlu2 %1273 }
 0x955   :  { %v1277_v22 = vmul.f32 %v1274_v21, %v2113_v34 }
 0x957   :  { %v1279_v23 = vadd.f32 1e-05, %v1277_v22 }
 0x959   :  { %1892 = vrsqrt.f32 %v1279_v23  ;;  %vm1287_vm0 = vweird.f32 %v1279_v23 }
 0x95c   :  { %v1276_v24 = vpop.xlane.xlu0 %1275 }
 0x95d   :  { %v1278_v10 = vmul.f32 %v1276_v24, %v2113_v34 }
 0x95f   :  { %v1893_v25 = vpop.eup %1892  ;;  %v1280_v26 = vadd.f32 1e-05, %v1278_v10 }
 0x960   :  { %v1282_v27 = vmul.f32 %v1893_v25, %v1279_v23  ;;  %vm1288_vm15 = vweird.f32 %v1893_v25 }
 0x961   :  { %1894 = vrsqrt.f32 %v1280_v26  ;;  %vm1289_vm1 = vmor %vm1287_vm0, %vm1288_vm15  ;;  %vm1297_vm3 = vweird.f32 %v1280_v26 }
 0x962   :  { %v1283_v28 = vmul.f32 %v1893_v25, %v1282_v27 }
 0x964   :  { %v1284_v29 = vmul.f32 0.5, %v1283_v28  ;;  %v1312_v48 = vpop.xlane.xlu0 %1311 }
 0x965   :  { %v1313_v49 = vmax.f32 %v1312_v48, 1.0 }
 0x966   :  { %v1285_v30 = vsub.f32 1.5, %v1284_v29 }
 0x967   :  { %v1895_v31 = vpop.eup %1894  ;;  %1896 = vrcp.f32 %v1313_v49  ;;  %vm1342_vm7 = vweird.f32 %v1313_v49  ;;  %v1348_v51 = vand.u32 2147483648, %v1313_v49  ;;  %v1346_v60 = vand.u32 2147483647, %v1313_v49 }
 0x968   :  { %v1286_v32 = vmul.f32 %v1893_v25, %v1285_v30  ;;  %v1292_v33 = vmul.f32 %v1895_v31, %v1280_v26  ;;  %vm1298_vm2 = vweird.f32 %v1895_v31  ;;  %1898 = vrcp.f32 %v1357_v55 }
 0x969   :  { %vm1299_vm6 = vmor %vm1297_vm3, %vm1298_vm2  ;;  %v1349_v61 = vor.u32 1.1754944e-38, %v1348_v51 }
 0x96a   :  { %v1290_v36 = vsel %vm1289_vm1, %v1893_v25, %v1286_v32  ;;  %v1293_v37 = vmul.f32 %v1895_v31, %v1292_v33 }
 0x96b   :  { %v1301_v34 = vmul.f32 %v1290_v36, %v1269_v15 }
 0x96c   :  { %v1294_v38 = vmul.f32 0.5, %v1293_v37 }
 0x96d   :  { %v1304_v3 = vmul.f32 %v1860_v35, %v1301_v34  ;;  %v1897_v52 = vpop.eup %1896 }
 0x96e   :  { %v1295_v40 = vsub.f32 1.5, %v1294_v38  ;;  %v1338_v53 = vmul.f32 %v1897_v52, %v1313_v49  ;;  %vm1343_vm4 = vweird.f32 %v1897_v52  ;;  %v1899_v39 = vpop.eup %1898 }
 0x96f   :  { %v1307_v59 = vadd.f32 %v1861_v44, %v1304_v3  ;;  %vm1344_vm8 = vmor %vm1342_vm7, %vm1343_vm4  ;;  %v1382_v62 = vmul.f32 %v1899_v39, %v1357_v55  ;;  %vm1387_vm10 = vweird.f32 %v1899_v39 }
 0x970   :  { %v1296_v41 = vmul.f32 %v1895_v31, %v1295_v40  ;;  %v1339_v56 = vsub.f32 1.0, %v1338_v53  ;;  %vm1388_vm11 = vmor %vm1386_vm9, %vm1387_vm10 }
 0x971   :  { %1332 = vmatpush.msra.mxu1 %v1307_v59  ;;  %v1383_v1 = vsub.f32 1.0, %v1382_v62 }
 0x972   :  { %v1300_v42 = vsel %vm1299_vm6, %v1895_v31, %v1296_v41  ;;  %1718 = vmatmul.msk.f32.vlgmr.msra.gmra.mxu1 %vm495_vm5, %v2069_v50  ;;  %v1340_v43 = vmul.f32 %v1897_v52, %v1339_v56 }
 0x973   :  { %v1302_v45 = vmul.f32 %v1300_v42, %v1270_v18  ;;  %v1384_v5 = vmul.f32 %v1899_v39, %v1383_v1 }
 0x974   :  { %v1341_v50 = vadd.f32 %v1897_v52, %v1340_v43 }
 0x975   :  { %v1305_v46 = vmul.f32 %v1860_v35, %v1302_v45  ;;  %v1385_v7 = vadd.f32 %v1899_v39, %v1384_v5 }
 0x976   :  { %v1345_v63 = vsel %vm1344_vm8, %v1897_v52, %v1341_v50 }
 0x977   :  { %v1308_v47 = vadd.f32 %v1861_v44, %v1305_v46  ;;  %v1389_v12 = vsel %vm1388_vm11, %v1899_v39, %v1385_v7 }
 0x978   :  { %v1394_v14 = vsel %vm1391_vm12, %v1393_v11, %v1389_v12 }
 0x979   :  { %1376 = vmatpush.msra.mxu2 %v1308_v47 }
 0x97a   :  { %1719 = vmatmul.msk.f32.vlgmr.msra.gmra.mxu2 %vm495_vm5, %v1353_v57  ;;  %vm1347_vm5 = vcmp.eq.f32.partialorder %v1346_v60, 8.507059e+37 }
 0x97b   :  { %v1350_v0 = vsel %vm1347_vm5, %v1349_v61, %v1345_v63 }
 0x9ef   :  { %v1334_v2 = vpop.f32.mrf.mxu1 }
 0x9f0   :  { %v1351_v4 = vmul.f32 %v1350_v0, %v1334_v2 }
 0x9f2   :  { %1352 = vst [vmem:[#allocation7] sm:$0x1] %v1351_v4 }
 0x9fd   :  { %v1378_v13 = vpop.f32.mrf.mxu2 }
 0x9fe   :  { %v1395_v15 = vmul.f32 %v1394_v14, %v1378_v13 }
 0xa00   :  { %1396 = vst [vmem:[#allocation7 + $0x1] sm:$0x1] %v1395_v15 }
 0xa01   :  { %1407 = dma.vmem_to_hbm [thread:$0]  %s1403_s10, 32, %s1405_s11, [#allocation4]  }
 0xa02   :  { %1976 = dma.done.wait [#allocation4], 32  }
 0xa03   :  { %1977 = vsyncadd [#allocation4], 4294967264 }
 0xa04   :  { %1412 = vsyncpa [#allocation3], 1 }
 0xa05   :  { %1413 = vsyncpa [#allocation6], 1 }
 0xa06   :  { %1414 = vsyncpa [#allocation4], 1 }

</bundles_post_ra>
